<compile_context>
chip_gen: v7x
topology: tpu7x:2x2x1
jax: 0.10.0
libtpu: 0.0.40
codegen_flags: <defaults>
</compile_context>

<pallas_src>
import functools

import jax
import jax.numpy as jnp
from jax import lax
from jax.experimental import pallas as pl
from jax.experimental.pallas import tpu as pltpu


# ----------------------------------------------------------------------------
# Fused kernel factory (closes over the static geometry).
# ----------------------------------------------------------------------------
def _make_fused_kernel(Cin, W, TH, HW, n_row_tiles):
    THW = TH * W
    WIN = THW + 2 * W            # TH rows + 1 halo row above / below
    f32 = jnp.float32

    def kernel(img_ref, gt_ref, mask_ref, cm_ref, wb_ref, bb_ref, wu_ref,
               bu_ref, out_ref):
        # img_ref : (1, Cin, H*W)   resident full image (compute dtype)
        # gt_ref  : (1, 3,  TH*W)   gt-normal row tile
        # mask_ref: (1, 1,  TH*W)   valid-mask row tile
        # cm_ref  : (2, WIN)        [col != 0, col != W-1] wrap masks
        # wb_ref  : (3, Cf, 3*Cin)  3x3 conv weight, wb[ky][o, kx*Cin + c]
        # bb_ref  : (Cf, 1)         conv bias (f32)
        # wu_ref  : (3, Cf)         1x1 conv weight (f32)
        # bu_ref  : (3, 1)          1x1 conv bias (f32)
        # out_ref : (1, 1, 1, 2)    per-(b, r) [loss_sum, valid_count]
        r = pl.program_id(1)

        # ------------------------------------------------------------------
        # 1) (TH + 2)-row window from the resident image; halo rows are
        #    clamped (128-aligned) reads zeroed with a scalar factor at the
        #    image borders.
        # ------------------------------------------------------------------
        start = pl.multiple_of(r * THW, 128)
        tstart = pl.multiple_of(jnp.maximum(start - W, 0), 128)
        bstart = pl.multiple_of(jnp.minimum(start + THW, HW - W), 128)
        center = img_ref[0, :, pl.ds(start, THW)]            # (Cin, THW)
        top = img_ref[0, :, pl.ds(tstart, W)]                # (Cin, W)
        bot = img_ref[0, :, pl.ds(bstart, W)]                # (Cin, W)
        top = top * (r > 0).astype(top.dtype)
        bot = bot * (r < n_row_tiles - 1).astype(bot.dtype)
        xwin = jnp.concatenate([top, center, bot], axis=1)   # (Cin, WIN)

        # x-shifted copies: lane rotations on the XLU; row wrap-around killed
        # by the precomputed per-column masks (emulates SAME x padding).
        not_left = cm_ref[0:1, :]                            # (1, WIN)
        not_right = cm_ref[1:2, :]                           # (1, WIN)
        xl = pltpu.roll(xwin, shift=1, axis=1) * not_left          # value at x-1
        xr = pltpu.roll(xwin, shift=WIN - 1, axis=1) * not_right   # value at x+1

        # ------------------------------------------------------------------
        # 2) (3*Cin, WIN) stack ordered (kx, cin); three accumulating per-ky
        #    matmuls over lane-aligned slices replace the 9-piece im2col slab.
        # ------------------------------------------------------------------
        stacked = jnp.concatenate([xl, xwin, xr], axis=0)     # (3*Cin, WIN)

        feat = jnp.dot(wb_ref[0], stacked[:, 0:THW],
                       preferred_element_type=f32)
        feat = feat + jnp.dot(wb_ref[1], stacked[:, W:W + THW],
                              preferred_element_type=f32)
        feat = feat + jnp.dot(wb_ref[2], stacked[:, 2 * W:2 * W + THW],
                              preferred_element_type=f32)
        feat = jnp.maximum(feat + bb_ref[...], 0.0)           # (Cf, THW) f32

        # 1x1 upconv (M=3, K=Cf): keep everything f32, no downcast.
        pred = jnp.dot(wu_ref[...], feat,
                       preferred_element_type=f32) + bu_ref[...]   # (3, THW)

        # ------------------------------------------------------------------
        # 3) masked cosine-similarity partial sums (f32):
        #    cos = <g,p>/max(|g||p|,1e-6) = <g,p>*rsqrt(max(|g|^2|p|^2,1e-12))
        # ------------------------------------------------------------------
        gt = gt_ref[0].astype(f32)                            # (3, THW)
        p0, p1, p2 = pred[0:1], pred[1:2], pred[2:3]
        g0, g1, g2 = gt[0:1], gt[1:2], gt[2:3]
        dotpg = p0 * g0 + p1 * g1 + p2 * g2
        np2 = p0 * p0 + p1 * p1 + p2 * p2
        ng2 = g0 * g0 + g1 * g1 + g2 * g2
        cos = dotpg * lax.rsqrt(jnp.maximum(np2 * ng2, 1e-12))   # EUP
        valid = (mask_ref[0] > 0.0).astype(f32)               # (1, THW)

        loss_sum = jnp.sum((1.0 - cos) * valid, keepdims=True)   # (1, 1)
        cnt_sum = jnp.sum(valid, keepdims=True)                  # (1, 1)
        out_ref[0, 0] = jnp.concatenate([loss_sum, cnt_sum], axis=1)

    return kernel


def _pick_row_tile(H, W, max_tile_pixels=32 * 1024):
    best = 1
    for th in range(1, H + 1):
        if H % th == 0 and th * W <= max_tile_pixels:
            best = th
    return best


def _vmem_cap_bytes():
    # Generation-aware cap: ~96 MiB on 128-MiB-VMEM parts (v5e/v6e),
    # <=56 MiB on 64-MiB parts (v7x); conservative fallback if query fails.
    try:
        cap = int(pltpu.get_tpu_info().vmem_capacity_bytes)
        return 96 * 1024 * 1024 if cap >= 100 * 1024 * 1024 else 56 * 1024 * 1024
    except Exception:
        return 56 * 1024 * 1024


# ----------------------------------------------------------------------------
# GeneralizedRCNN forward (training, 'normal_only', geometric_output == 0).
# ----------------------------------------------------------------------------
def generalized_rcnn_forward(params, images_nchw, normal_images_nchw,
                             mask_images_nchw, *, row_tile=None,
                             compute_dtype=jnp.float32):
    """Inputs follow the PyTorch NCHW convention. Returns {'loss_normal': scalar}."""
    B, Cin, H, W = images_nchw.shape
    assert normal_images_nchw.shape == (B, 3, H, W)
    assert mask_images_nchw.shape[0] == B and mask_images_nchw.shape[2:] == (H, W)
    assert W % 128 == 0, "lane-dense layout requires W to be a multiple of 128"
    # TODO(synk): W % 128 != 0 would need unaligned halo slices / remainder tiles.

    Cf = params["w_backbone"].shape[0]
    assert params["w_upconv"].shape == (3, Cf)

    TH = row_tile if row_tile is not None else _pick_row_tile(H, W)
    assert H % TH == 0
    n_row_tiles = H // TH
    HW, THW = H * W, TH * W
    WIN = THW + 2 * W

    # Free (metadata-only) NCHW -> (B, C, H*W) reshapes: no transpose, no pad.
    img = images_nchw.reshape(B, Cin, HW).astype(compute_dtype)
    gt = normal_images_nchw.reshape(B, 3, HW).astype(compute_dtype)
    mask = mask_images_nchw[:, :1].reshape(B, 1, HW).astype(compute_dtype)

    # Column wrap masks (compile-time constants of the geometry).
    col = jnp.arange(WIN, dtype=jnp.int32) % W
    colmask = jnp.stack([(col != 0), (col != W - 1)]).astype(compute_dtype)

    # 3x3 conv weight as three per-ky matmul slabs wb[ky][o, kx*Cin + c],
    # matching the [x-1, x, x+1] sublane order of the stacked buffer.
    wb = jnp.transpose(params["w_backbone"], (2, 0, 3, 1)).reshape(3, Cf, 3 * Cin)
    wb = wb.astype(compute_dtype)
    bb = params["b_backbone"].reshape(Cf, 1).astype(jnp.float32)
    wu = params["w_upconv"].astype(jnp.float32)            # stays f32 (tiny)
    bu = params["b_upconv"].reshape(3, 1).astype(jnp.float32)

    kernel = _make_fused_kernel(Cin, W, TH, HW, n_row_tiles)

    # Honest VMEM budget: double-buffered streamed blocks + resident weights +
    # in-kernel temporaries (xwin/xl/xr/stacked + f32 feat/pred/gt/cos maps).
    it = jnp.dtype(compute_dtype).itemsize
    stream_bytes = 2 * (Cin * HW * it            # resident image (x2 across b)
                        + 3 * THW * it           # gt row tile
                        + 1 * THW * it           # mask row tile
                        + 2 * WIN * it           # column masks
                        + 9 * Cf * Cin * it + (4 * Cf + 3) * 4
                        + 8 * 128 * 4)           # padded tiny output block
    temp_bytes = 6 * Cin * WIN * it + (Cf + 16) * THW * 4
    vmem_limit = int(min(max(stream_bytes + temp_bytes + (6 << 20), 32 << 20),
                         _vmem_cap_bytes()))

    # TODO(synk): on v7x with very large images, stream (TH+2)-row halo windows
    # instead of keeping the whole (Cin, H*W) image resident per batch element.
    parts = pl.pallas_call(
        kernel,
        out_shape=jax.ShapeDtypeStruct((B, n_row_tiles, 1, 2), jnp.float32),
        grid=(B, n_row_tiles),
        in_specs=[
            # raw image: fetched once per batch element, resident across r.
            pl.BlockSpec((1, Cin, HW), lambda b, r: (b, 0, 0)),
            # gt / mask stream in row tiles (pipelined against compute).
            # (Add pipeline_mode=pl.Buffered(3) only if DMA shows up exposed.)
            pl.BlockSpec((1, 3, THW), lambda b, r: (b, 0, r)),
            pl.BlockSpec((1, 1, THW), lambda b, r: (b, 0, r)),
            # column masks / weights / biases: resident for the whole grid.
            pl.BlockSpec((2, WIN), lambda b, r: (0, 0)),
            pl.BlockSpec((3, Cf, 3 * Cin), lambda b, r: (0, 0, 0)),
            pl.BlockSpec((Cf, 1), lambda b, r: (0, 0)),
            pl.BlockSpec((3, Cf), lambda b, r: (0, 0)),
            pl.BlockSpec((3, 1), lambda b, r: (0, 0)),
        ],
        out_specs=pl.BlockSpec((1, 1, 1, 2), lambda b, r: (b, r, 0, 0)),
        compiler_params=pltpu.CompilerParams(
            dimension_semantics=("parallel", "parallel"),
            vmem_limit_bytes=vmem_limit),
    )(img, gt, mask, colmask, wb, bb, wu, bu)

    # Tiny final reduction == torch's .mean() over the valid-pixel gather
    # (NaN if no valid pixels, same as the PyTorch module).
    loss_normal = jnp.sum(parts[..., 0]) / jnp.sum(parts[..., 1])
    return {"loss_normal": loss_normal}


# ----------------------------------------------------------------------------
# Pure-JAX reference (for correctness checking only).
# ----------------------------------------------------------------------------
def reference_forward(params, images, normals, masks):
    x = images.astype(jnp.float32)
    w = params["w_backbone"].astype(jnp.float32)
    feat = lax.conv_general_dilated(
        x, w, window_strides=(1, 1), padding="SAME",
        dimension_numbers=("NCHW", "OIHW", "NCHW"))
    feat = jnp.maximum(feat + params["b_backbone"][None, :, None, None], 0.0)
    pred = jnp.einsum("of,bfhw->bohw",
                      params["w_upconv"].astype(jnp.float32), feat)
    pred = pred + params["b_upconv"][None, :, None, None]
    gt = normals.astype(jnp.float32)
    dot = jnp.sum(pred * gt, axis=1)
    denom = jnp.maximum(jnp.sqrt(jnp.sum(pred * pred, axis=1)) *
                        jnp.sqrt(jnp.sum(gt * gt, axis=1)), 1e-6)
    cos = dot / denom
    valid = (masks[:, 0] > 0.0).astype(jnp.float32)
    return {"loss_normal": jnp.sum((1.0 - cos) * valid) / jnp.sum(valid)}


def init_params(key, cin=3, cf=32, cout=3):
    k1, k2, k3, k4 = jax.random.split(key, 4)
    return {
        "w_backbone": 0.1 * jax.random.normal(k1, (cf, cin, 3, 3), jnp.float32),
        "b_backbone": 0.01 * jax.random.normal(k2, (cf,), jnp.float32),
        "w_upconv": 0.1 * jax.random.normal(k3, (cout, cf), jnp.float32),
        "b_upconv": 0.01 * jax.random.normal(k4, (cout,), jnp.float32),
    }


if __name__ == "__main__":
    B, C, H, W = 2, 3, 16, 128   # W on the 128-lane axis (lane dense), small demo
    CF, COUT = 32, 3
    key = jax.random.PRNGKey(0)
    kp, ki, kg, km = jax.random.split(key, 4)

    params = init_params(kp, cin=C, cf=CF, cout=COUT)
    images = jax.random.normal(ki, (B, C, H, W), jnp.float32)
    normal_images = jax.random.normal(kg, (B, 3, H, W), jnp.float32)
    mask_images = (jax.random.uniform(km, (B, 1, H, W)) > 0.4).astype(jnp.float32)

    ref_loss = float(jax.block_until_ready(
        reference_forward(params, images, normal_images, mask_images)["loss_normal"]))

    # f32 path (faithful to the PyTorch module); row_tile=8 -> 2 row tiles so
    # the halo handling and per-tile partial-sum path are exercised.
    fwd_f32 = jax.jit(functools.partial(
        generalized_rcnn_forward, row_tile=8, compute_dtype=jnp.float32))
    loss_f32 = jax.block_until_ready(
        fwd_f32(params, images, normal_images, mask_images)["loss_normal"])
    assert jnp.isfinite(loss_f32)
    assert abs(float(loss_f32) - ref_loss) <= 1e-2 + 1e-2 * abs(ref_loss), (
        float(loss_f32), ref_loss)

    # bf16 streaming path (perf default on v6e/v7x); loss math stays f32.
    fwd_bf16 = jax.jit(functools.partial(
        generalized_rcnn_forward, row_tile=8, compute_dtype=jnp.bfloat16))
    loss_bf16 = jax.block_until_ready(
        fwd_bf16(params, images, normal_images, mask_images)["loss_normal"])
    assert jnp.isfinite(loss_bf16)
    assert abs(float(loss_bf16) - ref_loss) <= 0.1, (float(loss_bf16), ref_loss)

    print("KERNEL_OK")
</pallas_src>

<mosaic_0001>
module attributes {stable_mosaic.version = 11 : i64} {
  func.func @kernel(%arg0: i32, %arg1: i32, %arg2: memref<1x3x2048xf32, #tpu.memory_space<vmem>>, %arg3: memref<1x3x1024xf32, #tpu.memory_space<vmem>>, %arg4: memref<1x1x1024xf32, #tpu.memory_space<vmem>>, %arg5: memref<2x1280xf32, #tpu.memory_space<vmem>>, %arg6: memref<3x32x9xf32, #tpu.memory_space<vmem>>, %arg7: memref<32x1xf32, #tpu.memory_space<vmem>>, %arg8: memref<3x32xf32, #tpu.memory_space<vmem>>, %arg9: memref<3x1xf32, #tpu.memory_space<vmem>>, %arg10: memref<1x1x1x2xf32, #tpu.memory_space<vmem>>) attributes {dimension_semantics = [#tpu.dimension_semantics<parallel>, #tpu.dimension_semantics<parallel>], iteration_bounds = array<i64: 2, 2>, scalar_prefetch = 0 : i64, scratch_operands = 0 : i64, tpu.core_type = #tpu.core_type<tc>, window_params = [{transform_indices = @transform_0, window_bounds = array<i64: 1, 3, 2048>}, {transform_indices = @transform_1, window_bounds = array<i64: 1, 3, 1024>}, {transform_indices = @transform_2, window_bounds = array<i64: 1, 1, 1024>}, {pipeline_mode = #tpu.pipeline_mode<synchronous>, transform_indices = @transform_3, window_bounds = array<i64: 2, 1280>}, {pipeline_mode = #tpu.pipeline_mode<synchronous>, transform_indices = @transform_4, window_bounds = array<i64: 3, 32, 9>}, {pipeline_mode = #tpu.pipeline_mode<synchronous>, transform_indices = @transform_5, window_bounds = array<i64: 32, 1>}, {pipeline_mode = #tpu.pipeline_mode<synchronous>, transform_indices = @transform_6, window_bounds = array<i64: 3, 32>}, {pipeline_mode = #tpu.pipeline_mode<synchronous>, transform_indices = @transform_7, window_bounds = array<i64: 3, 1>}, {transform_indices = @transform_8, window_bounds = array<i64: 1, 1, 1, 2>}]} {
    %c1024_i32 = arith.constant 1024 : i32
    %0 = arith.muli %arg1, %c1024_i32 : i32
    %1 = tpu.assume_multiple %0, 128 : i32
    %c128_i32 = arith.constant 128 : i32
    %2 = arith.subi %1, %c128_i32 : i32
    %c0_i32 = arith.constant 0 : i32
    %3 = arith.maxsi %2, %c0_i32 : i32
    %4 = tpu.assume_multiple %3, 128 : i32
    %c1024_i32_0 = arith.constant 1024 : i32
    %5 = arith.addi %1, %c1024_i32_0 : i32
    %c1920_i32 = arith.constant 1920 : i32
    %6 = arith.minsi %5, %c1920_i32 : i32
    %7 = tpu.assume_multiple %6, 128 : i32
    %c0 = arith.constant 0 : index
    %c0_1 = arith.constant 0 : index
    %8 = arith.index_cast %1 : i32 to index
    %9 = vector.load %arg2[%c0, %c0_1, %8] : memref<1x3x2048xf32, #tpu.memory_space<vmem>>, vector<1x3x1024xf32>
    %10 = vector.shape_cast %9 : vector<1x3x1024xf32> to vector<3x1024xf32>
    %c0_2 = arith.constant 0 : index
    %c0_3 = arith.constant 0 : index
    %11 = arith.index_cast %4 : i32 to index
    %12 = vector.load %arg2[%c0_2, %c0_3, %11] : memref<1x3x2048xf32, #tpu.memory_space<vmem>>, vector<1x3x128xf32>
    %13 = vector.shape_cast %12 : vector<1x3x128xf32> to vector<3x128xf32>
    %c0_4 = arith.constant 0 : index
    %c0_5 = arith.constant 0 : index
    %14 = arith.index_cast %7 : i32 to index
    %15 = vector.load %arg2[%c0_4, %c0_5, %14] : memref<1x3x2048xf32, #tpu.memory_space<vmem>>, vector<1x3x128xf32>
    %16 = vector.shape_cast %15 : vector<1x3x128xf32> to vector<3x128xf32>
    %c0_i32_6 = arith.constant 0 : i32
    %17 = arith.cmpi sgt, %arg1, %c0_i32_6 : i32
    %18 = arith.extui %17 : i1 to i32
    %19 = arith.sitofp %18 : i32 to f32
    %20 = vector.broadcast %19 : f32 to vector<3x128xf32>
    %21 = arith.mulf %13, %20 : vector<3x128xf32>
    %c1_i32 = arith.constant 1 : i32
    %22 = arith.cmpi slt, %arg1, %c1_i32 : i32
    %23 = arith.extui %22 : i1 to i32
    %24 = arith.sitofp %23 : i32 to f32
    %25 = vector.broadcast %24 : f32 to vector<3x128xf32>
    %26 = arith.mulf %16, %25 : vector<3x128xf32>
    %27 = tpu.concatenate %21, %10, %26 in 1 : vector<3x128xf32>, vector<3x1024xf32>, vector<3x128xf32> -> vector<3x1280xf32>
    %c0_7 = arith.constant 0 : index
    %c0_8 = arith.constant 0 : index
    %28 = vector.load %arg5[%c0_7, %c0_8] : memref<2x1280xf32, #tpu.memory_space<vmem>>, vector<1x1280xf32>
    %c1 = arith.constant 1 : index
    %c0_9 = arith.constant 0 : index
    %29 = vector.load %arg5[%c1, %c0_9] : memref<2x1280xf32, #tpu.memory_space<vmem>>, vector<1x1280xf32>
    %c1_i32_10 = arith.constant 1 : i32
    %30 = tpu.dynamic_rotate %27 by %c1_i32_10 dim 1 : vector<3x1280xf32>, i32 -> vector<3x1280xf32>
    %31 = vector.broadcast %28 : vector<1x1280xf32> to vector<3x1280xf32>
    %32 = arith.mulf %30, %31 : vector<3x1280xf32>
    %c1279_i32 = arith.constant 1279 : i32
    %33 = tpu.dynamic_rotate %27 by %c1279_i32 dim 1 : vector<3x1280xf32>, i32 -> vector<3x1280xf32>
    %34 = vector.broadcast %29 : vector<1x1280xf32> to vector<3x1280xf32>
    %35 = arith.mulf %33, %34 : vector<3x1280xf32>
    %36 = tpu.concatenate %32, %27, %35 in 0 : vector<3x1280xf32>, vector<3x1280xf32>, vector<3x1280xf32> -> vector<9x1280xf32>
    %c0_11 = arith.constant 0 : index
    %c0_12 = arith.constant 0 : index
    %c0_13 = arith.constant 0 : index
    %37 = vector.load %arg6[%c0_11, %c0_12, %c0_13] : memref<3x32x9xf32, #tpu.memory_space<vmem>>, vector<1x32x9xf32>
    %38 = vector.shape_cast %37 : vector<1x32x9xf32> to vector<32x9xf32>
    %39 = vector.extract_strided_slice %36 {offsets = [0, 0], sizes = [9, 1024], strides = [1, 1]} : vector<9x1280xf32> to vector<9x1024xf32>
    %cst = arith.constant dense<0.000000e+00> : vector<32x1024xf32>
    %40 = tpu.matmul %38, %39, %cst {dimension_numbers = #tpu.dot_dimension_numbers<[1], [0], [0], [1], [0, 0, 1, 1], [], []>} : vector<32x9xf32>, vector<9x1024xf32>, vector<32x1024xf32> -> vector<32x1024xf32>
    %c1_14 = arith.constant 1 : index
    %c0_15 = arith.constant 0 : index
    %c0_16 = arith.constant 0 : index
    %41 = vector.load %arg6[%c1_14, %c0_15, %c0_16] : memref<3x32x9xf32, #tpu.memory_space<vmem>>, vector<1x32x9xf32>
    %42 = vector.shape_cast %41 : vector<1x32x9xf32> to vector<32x9xf32>
    %43 = vector.extract_strided_slice %36 {offsets = [0, 128], sizes = [9, 1024], strides = [1, 1]} : vector<9x1280xf32> to vector<9x1024xf32>
    %cst_17 = arith.constant dense<0.000000e+00> : vector<32x1024xf32>
    %44 = tpu.matmul %42, %43, %cst_17 {dimension_numbers = #tpu.dot_dimension_numbers<[1], [0], [0], [1], [0, 0, 1, 1], [], []>} : vector<32x9xf32>, vector<9x1024xf32>, vector<32x1024xf32> -> vector<32x1024xf32>
    %45 = arith.addf %40, %44 : vector<32x1024xf32>
    %c2 = arith.constant 2 : index
    %c0_18 = arith.constant 0 : index
    %c0_19 = arith.constant 0 : index
    %46 = vector.load %arg6[%c2, %c0_18, %c0_19] : memref<3x32x9xf32, #tpu.memory_space<vmem>>, vector<1x32x9xf32>
    %47 = vector.shape_cast %46 : vector<1x32x9xf32> to vector<32x9xf32>
    %48 = vector.extract_strided_slice %36 {offsets = [0, 256], sizes = [9, 1024], strides = [1, 1]} : vector<9x1280xf32> to vector<9x1024xf32>
    %cst_20 = arith.constant dense<0.000000e+00> : vector<32x1024xf32>
    %49 = tpu.matmul %47, %48, %cst_20 {dimension_numbers = #tpu.dot_dimension_numbers<[1], [0], [0], [1], [0, 0, 1, 1], [], []>} : vector<32x9xf32>, vector<9x1024xf32>, vector<32x1024xf32> -> vector<32x1024xf32>
    %50 = arith.addf %45, %49 : vector<32x1024xf32>
    %c0_21 = arith.constant 0 : index
    %c0_22 = arith.constant 0 : index
    %51 = vector.load %arg7[%c0_21, %c0_22] : memref<32x1xf32, #tpu.memory_space<vmem>>, vector<32x1xf32>
    %52 = vector.broadcast %51 : vector<32x1xf32> to vector<32x1024xf32>
    %53 = arith.addf %50, %52 : vector<32x1024xf32>
    %cst_23 = arith.constant 0.000000e+00 : f32
    %54 = vector.broadcast %cst_23 : f32 to vector<32x1024xf32>
    %55 = arith.maximumf %53, %54 : vector<32x1024xf32>
    %c0_24 = arith.constant 0 : index
    %c0_25 = arith.constant 0 : index
    %56 = vector.load %arg8[%c0_24, %c0_25] : memref<3x32xf32, #tpu.memory_space<vmem>>, vector<3x32xf32>
    %cst_26 = arith.constant dense<0.000000e+00> : vector<3x1024xf32>
    %57 = tpu.matmul %56, %55, %cst_26 {dimension_numbers = #tpu.dot_dimension_numbers<[1], [0], [0], [1], [0, 0, 1, 1], [], []>} : vector<3x32xf32>, vector<32x1024xf32>, vector<3x1024xf32> -> vector<3x1024xf32>
    %c0_27 = arith.constant 0 : index
    %c0_28 = arith.constant 0 : index
    %58 = vector.load %arg9[%c0_27, %c0_28] : memref<3x1xf32, #tpu.memory_space<vmem>>, vector<3x1xf32>
    %59 = vector.broadcast %58 : vector<3x1xf32> to vector<3x1024xf32>
    %60 = arith.addf %57, %59 : vector<3x1024xf32>
    %c0_29 = arith.constant 0 : index
    %c0_30 = arith.constant 0 : index
    %c0_31 = arith.constant 0 : index
    %61 = vector.load %arg3[%c0_29, %c0_30, %c0_31] : memref<1x3x1024xf32, #tpu.memory_space<vmem>>, vector<1x3x1024xf32>
    %62 = vector.shape_cast %61 : vector<1x3x1024xf32> to vector<3x1024xf32>
    %63 = vector.extract_strided_slice %60 {offsets = [0, 0], sizes = [1, 1024], strides = [1, 1]} : vector<3x1024xf32> to vector<1x1024xf32>
    %64 = vector.extract_strided_slice %60 {offsets = [1, 0], sizes = [1, 1024], strides = [1, 1]} : vector<3x1024xf32> to vector<1x1024xf32>
    %65 = vector.extract_strided_slice %60 {offsets = [2, 0], sizes = [1, 1024], strides = [1, 1]} : vector<3x1024xf32> to vector<1x1024xf32>
    %66 = vector.extract_strided_slice %62 {offsets = [0, 0], sizes = [1, 1024], strides = [1, 1]} : vector<3x1024xf32> to vector<1x1024xf32>
    %67 = vector.extract_strided_slice %62 {offsets = [1, 0], sizes = [1, 1024], strides = [1, 1]} : vector<3x1024xf32> to vector<1x1024xf32>
    %68 = vector.extract_strided_slice %62 {offsets = [2, 0], sizes = [1, 1024], strides = [1, 1]} : vector<3x1024xf32> to vector<1x1024xf32>
    %69 = arith.mulf %63, %66 : vector<1x1024xf32>
    %70 = arith.mulf %64, %67 : vector<1x1024xf32>
    %71 = arith.addf %69, %70 : vector<1x1024xf32>
    %72 = arith.mulf %65, %68 : vector<1x1024xf32>
    %73 = arith.addf %71, %72 : vector<1x1024xf32>
    %74 = arith.mulf %63, %63 : vector<1x1024xf32>
    %75 = arith.mulf %64, %64 : vector<1x1024xf32>
    %76 = arith.addf %74, %75 : vector<1x1024xf32>
    %77 = arith.mulf %65, %65 : vector<1x1024xf32>
    %78 = arith.addf %76, %77 : vector<1x1024xf32>
    %79 = arith.mulf %66, %66 : vector<1x1024xf32>
    %80 = arith.mulf %67, %67 : vector<1x1024xf32>
    %81 = arith.addf %79, %80 : vector<1x1024xf32>
    %82 = arith.mulf %68, %68 : vector<1x1024xf32>
    %83 = arith.addf %81, %82 : vector<1x1024xf32>
    %84 = arith.mulf %78, %83 : vector<1x1024xf32>
    %cst_32 = arith.constant 9.99999996E-13 : f32
    %85 = vector.broadcast %cst_32 : f32 to vector<1x1024xf32>
    %86 = arith.maximumf %84, %85 : vector<1x1024xf32>
    %87 = math.rsqrt %86 : vector<1x1024xf32>
    %88 = arith.mulf %73, %87 : vector<1x1024xf32>
    %c0_33 = arith.constant 0 : index
    %c0_34 = arith.constant 0 : index
    %c0_35 = arith.constant 0 : index
    %89 = vector.load %arg4[%c0_33, %c0_34, %c0_35] : memref<1x1x1024xf32, #tpu.memory_space<vmem>>, vector<1x1x1024xf32>
    %90 = vector.shape_cast %89 : vector<1x1x1024xf32> to vector<1x1024xf32>
    %cst_36 = arith.constant 0.000000e+00 : f32
    %91 = vector.broadcast %cst_36 : f32 to vector<1x1024xf32>
    %92 = arith.cmpf ogt, %90, %91 : vector<1x1024xf32>
    %93 = arith.extui %92 : vector<1x1024xi1> to vector<1x1024xi32>
    %94 = arith.sitofp %93 : vector<1x1024xi32> to vector<1x1024xf32>
    %cst_37 = arith.constant 1.000000e+00 : f32
    %95 = vector.broadcast %cst_37 : f32 to vector<1x1024xf32>
    %96 = arith.subf %95, %88 : vector<1x1024xf32>
    %97 = arith.mulf %96, %94 : vector<1x1024xf32>
    %98 = vector.shape_cast %97 : vector<1x1024xf32> to vector<1x1x1024xf32>
    %cst_38 = arith.constant dense<0.000000e+00> : vector<1xf32>
    %99 = vector.multi_reduction <add>, %98, %cst_38 [1, 2] : vector<1x1x1024xf32> to vector<1xf32>
    %100 = vector.shape_cast %99 : vector<1xf32> to vector<1x1x1xf32>
    %101 = vector.extract %100[0, 0, 0] : f32 from vector<1x1x1xf32>
    %102 = vector.broadcast %101 : f32 to vector<1x1xf32>
    %103 = vector.shape_cast %94 : vector<1x1024xf32> to vector<1x1x1024xf32>
    %cst_39 = arith.constant dense<0.000000e+00> : vector<1xf32>
    %104 = vector.multi_reduction <add>, %103, %cst_39 [1, 2] : vector<1x1x1024xf32> to vector<1xf32>
    %105 = vector.shape_cast %104 : vector<1xf32> to vector<1x1x1xf32>
    %106 = vector.extract %105[0, 0, 0] : f32 from vector<1x1x1xf32>
    %107 = vector.broadcast %106 : f32 to vector<1x1xf32>
    %108 = tpu.concatenate %102, %107 in 1 : vector<1x1xf32>, vector<1x1xf32> -> vector<1x2xf32>
    %c0_40 = arith.constant 0 : index
    %c0_41 = arith.constant 0 : index
    %c0_42 = arith.constant 0 : index
    %c0_43 = arith.constant 0 : index
    %109 = vector.load %arg10[%c0_40, %c0_41, %c0_42, %c0_43] : memref<1x1x1x2xf32, #tpu.memory_space<vmem>>, vector<1x1x1x2xf32>
    %110 = vector.shape_cast %109 : vector<1x1x1x2xf32> to vector<1x2xf32>
    %111 = vector.shape_cast %108 : vector<1x2xf32> to vector<1x1x1x2xf32>
    tpu.vector_store %arg10[%c0_40, %c0_41, %c0_42, %c0_43], %111 {strides = array<i32>} : memref<1x1x1x2xf32, #tpu.memory_space<vmem>>, vector<1x1x1x2xf32>,
    return
  }
  func.func @transform_0(%arg0: i32, %arg1: i32) -> (i32, i32, i32) {
    %c0_i32 = arith.constant 0 : i32
    %c0_i32_0 = arith.constant 0 : i32
    %c0_i32_1 = arith.constant 0 : i32
    return %arg0, %c0_i32, %c0_i32_0 : i32, i32, i32
  }
  func.func @transform_1(%arg0: i32, %arg1: i32) -> (i32, i32, i32) {
    %c0_i32 = arith.constant 0 : i32
    %c0_i32_0 = arith.constant 0 : i32
    return %arg0, %c0_i32, %arg1 : i32, i32, i32
  }
  func.func @transform_2(%arg0: i32, %arg1: i32) -> (i32, i32, i32) {
    %c0_i32 = arith.constant 0 : i32
    %c0_i32_0 = arith.constant 0 : i32
    return %arg0, %c0_i32, %arg1 : i32, i32, i32
  }
  func.func @transform_3(%arg0: i32, %arg1: i32) -> (i32, i32) {
    %c0_i32 = arith.constant 0 : i32
    %c0_i32_0 = arith.constant 0 : i32
    %c0_i32_1 = arith.constant 0 : i32
    return %c0_i32, %c0_i32_0 : i32, i32
  }
  func.func @transform_4(%arg0: i32, %arg1: i32) -> (i32, i32, i32) {
    %c0_i32 = arith.constant 0 : i32
    %c0_i32_0 = arith.constant 0 : i32
    %c0_i32_1 = arith.constant 0 : i32
    %c0_i32_2 = arith.constant 0 : i32
    return %c0_i32, %c0_i32_0, %c0_i32_1 : i32, i32, i32
  }
  func.func @transform_5(%arg0: i32, %arg1: i32) -> (i32, i32) {
    %c0_i32 = arith.constant 0 : i32
    %c0_i32_0 = arith.constant 0 : i32
    %c0_i32_1 = arith.constant 0 : i32
    return %c0_i32, %c0_i32_0 : i32, i32
  }
  func.func @transform_6(%arg0: i32, %arg1: i32) -> (i32, i32) {
    %c0_i32 = arith.constant 0 : i32
    %c0_i32_0 = arith.constant 0 : i32
    %c0_i32_1 = arith.constant 0 : i32
    return %c0_i32, %c0_i32_0 : i32, i32
  }
  func.func @transform_7(%arg0: i32, %arg1: i32) -> (i32, i32) {
    %c0_i32 = arith.constant 0 : i32
    %c0_i32_0 = arith.constant 0 : i32
    %c0_i32_1 = arith.constant 0 : i32
    return %c0_i32, %c0_i32_0 : i32, i32
  }
  func.func @transform_8(%arg0: i32, %arg1: i32) -> (i32, i32, i32, i32) {
    %c0_i32 = arith.constant 0 : i32
    %c0_i32_0 = arith.constant 0 : i32
    %c0_i32_1 = arith.constant 0 : i32
    return %arg0, %arg1, %c0_i32, %c0_i32_0 : i32, i32, i32, i32
  }
}

</mosaic_0001>

<bundles_post_ra>
// kernel: generalized_rcnn_forward.1
= control target key start
LH: loop header
LB: loop body
LE: loop exit
PB: predicated region body
PF: predicated region fallthrough
CT: control target
= control target key end

     0   :  { %s3334_s27 = smov 0   ;;  %s3336_s28 = smov 0   ;;  %s4221_s0 = inlined_call_operand.vmem [shape: f32[2,3,2048], index: 0, kind: input, shape index: {}]   ;;  %s4222_s1 = inlined_call_operand.vmem [shape: f32[2,3,2048], index: 1, kind: input, shape index: {}]   ;;  %s4223_s2 = inlined_call_operand.vmem [shape: f32[2,1,2048], index: 2, kind: input, shape index: {}]   ;;  %s4224_s3 = inlined_call_operand.vmem [shape: f32[2,1280], index: 3, kind: input, shape index: {}]   ;;  %s4225_s4 = inlined_call_operand.vmem [shape: f32[3,32,9], index: 4, kind: input, shape index: {}]   ;;  %s4226_s5 = inlined_call_operand.vmem [shape: f32[32,1], index: 5, kind: input, shape index: {}]   ;;  %s4227_s6 = inlined_call_operand.vmem [shape: f32[3,32], index: 6, kind: input, shape index: {}]   ;;  %s4228_s7 = inlined_call_operand.vmem [shape: f32[3,1], index: 7, kind: input, shape index: {}]   ;;  %s4229_s8 = inlined_call_operand.vmem [shape: f32[2,2,1,2], index: 8, kind: output, shape index: {}]  }
   0x1   :  { %s3338_s29 = smov 0   ;;  %s3340_s30 = smov 0  }
   0x2   :  { %s3342_s9 = smov 0  }
   0x3 LB: > { %s27_s10 = sadd.s32 1, %s3274_s29  ;;  %s30_s11 = sadd.s32 1, %s3278_s30  ;;  %s3282_s9 = sphi %s3342_s9, %s18_s9   ;;  %s3278_s30 = sphi %s3340_s30, %s4244_s30   ;;  %s3274_s29 = sphi %s3338_s29, %s4243_s29   ;;  %s3270_s28 = sphi %s3336_s28, %s4242_s28   ;;  %s3266_s27 = sphi %s3334_s27, %s4241_s27  }
   0x4   : > { %p28_p0 = scmp.ge.s32.totalorder %s27_s10, 2  ;;  %p2892_p1 = scmp.ge.s32.totalorder %s3282_s9, 1 }
   0x5   : > { %p309_p2 = scmp.lt.s32.totalorder %s3282_s9, 5 }
   0x6   : > { %s4246_s10 = smov (%p28_p0, %s27_s10), 0  ;;  %s4248_s11 = smov (!%p28_p0, %s30_s11), %s3278_s30 }
   0x7   : > { %p310_p3 = pnand %p2892_p1, %p309_p2  ;;  %p32_p4 = scmp.ge.s32.totalorder %s4248_s11, 2 }
   0x8   : > { %p362_p5 = scmp.lt.s32.totalorder (!%p310_p3), %s3270_s28, 1  ;;  %v3284_v0 = vmov (!%p310_p3), 0.0   ;;  %s3372_s13 = sshll.u32 (!%p310_p3), %s3266_s27, 10  ;;  %v467_v15 = vlaneseq (!%p310_p3)  ;;  %v1881_v16 = vld [vmem:[%s4226_s5] sm:$0xff] (!%p310_p3)  ;;  %v1882_v17 = vld [vmem:[%s4226_s5 + $0x8] sm:$0xff] (!%p310_p3)  ;;  %v3287_v18 = vmov (!%p310_p3), 0  }
   0x9   : > { %s4250_s11 = smov (%p32_p4, %s4248_s11), 0  ;;  %313 = sbr.rel (%p310_p3) target bundleno = 942 (0x3ae), region = 52 }
   0xa   : > { %812 = vmatprep.mubr.f32.mxu0 (!%p310_p3), %v3284_v0  ;;  %901 = vmatprep.mubr.f32.mxu1 (!%p310_p3), %v3284_v0  ;;  %s400_s17 = sshra.s32 (!%p310_p3), %s3372_s13, 7  ;;  %s3285_s20 = smov (!%p310_p3), 127   ;;  %v3469_v19 = vshrl.u32 (!%p310_p3), %v467_v15, 7  ;;  %v1883_v20 = vld [vmem:[%s4226_s5 + $0x10] sm:$0xff] (!%p310_p3)  ;;  %v1884_v21 = vld [vmem:[%s4226_s5 + $0x18] sm:$0xff] (!%p310_p3)  ;;  %v3477_v22 = vand.u32 (!%p310_p3), 127, %v467_v15 }
   0xb   : > { %s2903_s18 = sshll.u32 (!%p310_p3), %s400_s17, 2  ;;  %s3286_s21 = smov (!%p310_p3), 1   ;;  %3222 = vset.pattern.permute.xlu0 (!%p310_p3), %v3287_v18  ;;  %3223 = vset.pattern.permute.xlu1 (!%p310_p3), %v3287_v18  ;;  %v1970_v26 = vld [vmem:[%s4228_s7] sm:$0x7] (!%p310_p3)  ;;  %vm687_vm2 = vcmask (!%p310_p3), 1042432   ;;  %vm698_vm3 = vcmask (!%p310_p3), 1045504  }
   0xc   : > { %s2902_s22 = sadd.s32 (!%p310_p3), 4294967168, %s3372_s13  ;;  %p418_p6 = scmp.gt.s32.totalorder (!%p310_p3), %s3266_s27, 0  ;;  %v3480_v25 = vsub.s32 (!%p310_p3), 2, %v3469_v19  ;;  %v3488_v27 = vld [vmem:[%s4224_s3] ss:$2 sm:$0xff] (!%p310_p3)  ;;  %vm469_vm0 = vcmp.lt.s32.totalorder (!%p310_p3), %v3477_v22, 1 }
   0xd   : > { %p395_p7 = scmp.gt.s32.totalorder (!%p310_p3), %s2902_s22, 0  ;;  %s397_s25 = sadd.s32 (!%p310_p3), 1024, %s3372_s13  ;;  %v3494_v28 = vld [vmem:[%s4224_s3 + $0x1] ss:$2 sm:$0xff] (!%p310_p3)  ;;  %v3497_v29 = vsub.s32 (!%p310_p3), 1, %v3469_v19  ;;  %v3504_v33 = vsub.s32 (!%p310_p3), 4, %v3469_v19 }
   0xe   : > { %p398_p8 = scmp.lt.s32.totalorder (!%p310_p3), %s397_s25, 1920  ;;  %p388_p9 = scmp.lt.s32.totalorder (!%p310_p3), %s3266_s27, 1  ;;  %v493_v32 = vrot.slane (!%p310_p3), %v3488_v27, %v3480_v25  ;;  %vm562_vm1 = vcmp.lt.s32.totalorder (!%p310_p3), %v3477_v22, 127  ;;  %v586_v35 = vrot.slane (!%p310_p3), %v3494_v28, %v3480_v25  ;;  %v3512_v36 = vsub.s32 (!%p310_p3), 3, %v3469_v19 }
   0xf   : > { %v582_v37 = vrot.slane (!%p310_p3), %v3494_v28, %v3497_v29  ;;  %v489_v45 = vrot.slane (!%p310_p3), %v3488_v27, %v3497_v29  ;;  %v594_v47 = vrot.slane (!%p310_p3), %v3494_v28, %v3504_v33  ;;  %vm731_vm4 = vcmask (!%p310_p3), 1040384  }
  0x10   : > { %s4252_s28 = smov (!%p362_p5, %s3270_s28), 1  ;;  %s4254_s22 = smov (!%p395_p7, %s2902_s22), 0  ;;  %v590_v46 = vrot.slane %v3494_v28, %v3512_v36  ;;  %v497_v53 = vrot.slane %v3488_v27, %v3512_v36  ;;  %v501_v54 = vrot.slane %v3488_v27, %v3504_v33  ;;  %vm3288_vm5 = vmmov 1  }
  0x11   : > { %s3004_s12 = sshll.u32 %s4252_s28, 6  ;;  %s408_s26 = sshra.s32 %s4254_s22, 7  ;;  %vm3545_vm6 = vmpackc.low %vm731_vm4, %vm3288_vm5  ;;  %v3550_v62 = vsub.s32 5, %v3469_v19  ;;  %v3553_v63 = vsub.s32 6, %v3469_v19  ;;  %vm718_vm7 = vcmask 72704   ;;  %vm1976_vm8 = vcmask 261120  }
  0x12   : > { %s3377_s16 = scalar_lea.vmem %s4221_s0, %s3004_s12  ;;  %s2904_s12 = sshll.u32 %s408_s26, 2  ;;  %vm2771_vm10 = vcmask 7168   ;;  %vm2773_vm11 = vcmask 8192  }
  0x13   : > { %s3381_s19 = scalar_lea.vmem %s3377_s16, %s2903_s18  ;;  %s411_s14 = scalar_lea.vmem %s3377_s16, %s2904_s12 }
  0x14   : > { %v3384_v1 = vld [vmem:[%s3381_s19 + $0x8] sm:$0x77]  ;;  %v3387_v2 = vld [vmem:[%s3381_s19] sm:$0x77]  ;;  %s419_s23 = scalar_select %p418_p6, 1, 0 }
  0x15   : > { %548 = vrot.lane.b32.xlu0 %v3384_v1, %s3285_s20  ;;  %449 = vrot.lane.b32.xlu1 %v3387_v2, %s3286_s21  ;;  %v3395_v3 = vcombine.high %v3387_v2, %v3387_v2  ;;  %v3405_v4 = vld [vmem:[%s3381_s19 + $0x10] sm:$0x77]  ;;  %v412_v6 = vld [vmem:[%s411_s14] sm:$0x7]  ;;  %v3414_v7 = vcombine.high %v3384_v1, %v3384_v1  ;;  %s4256_s25 = smov (!%p398_p8, %s397_s25), 1920  ;;  %v638_v49 = vrot.slane %v3387_v2, 5 }
  0x16   : > { %s420_s24 = scvt.s32.f32 %s419_s23  ;;  %s413_s13 = sshra.s32 %s4256_s25, 7  ;;  %v3431_v9 = vcombine.high %v3405_v4, %v3405_v4  ;;  %v3434_v10 = vld [vmem:[%s3381_s19 + $0x18] sm:$0x77] }
  0x17   : > { %s424_s15 = scalar_select %p388_p9, 1, 0  ;;  %v3449_v14 = vcombine.high %v3434_v10, %v3434_v10  ;;  %v639_v40 = vrot.slane %v3395_v3, 5 }
  0x18   : > { %v421_v5 = vstv %s420_s24  ;;  %s2905_s17 = sshll.u32 %s413_s13, 2  ;;  %s2900_s14 = sshll.u32 %s4252_s28, 1 }
  0x19   : > { %544 = vrot.lane.b32.xlu0 %v3387_v2, %s3285_s20  ;;  %451 = vrot.lane.b32.xlu1 %v3395_v3, %s3286_s21  ;;  %v3416_v8 = vmul.f32 %v421_v5, %v412_v6  ;;  %s425_s18 = scvt.s32.f32 %s424_s15  ;;  %s416_s22 = scalar_lea.vmem %s3377_s16, %s2905_s17 }
  0x1a   : > { %v417_v11 = vld [vmem:[%s416_s22] sm:$0x7]  ;;  %s2895_s22 = sshll.u32 %s3266_s27, 3  ;;  %s2896_s16 = sshll.u32 %s4252_s28, 4 }
  0x1b   : > { %v426_v12 = vstv %s425_s18  ;;  %p370_p10 = scmp.lt.s32.totalorder %s2895_s22, 15  ;;  %s4260_s27 = smov (!%p388_p9, %s3266_s27), 1 }
  0x1c   : > { %v3445_v13 = vmul.f32 %v426_v12, %v417_v11  ;;  %v640_v11 = vrot.slane %v3384_v1, 5  ;;  %v641_v12 = vrot.slane %v3414_v7, 5  ;;  %s391_s13 = sadd.s32 %s2900_s14, %s4260_s27 }
  0x1d   : > { %552 = vrot.lane.b32.xlu1 %v3405_v4, %s3285_s20  ;;  %546 = vrot.lane.b32.xlu0 %v3395_v3, %s3285_s20  ;;  %s4258_s22 = smov (!%p370_p10, %s2895_s22), 15 }
  0x1e   : > { %s3958_s19 = sadd.s32 %s2896_s16, %s4258_s22  ;;  %s392_s22 = scalar_lea.vmem %s4229_s8, %s391_s13 }
  0x1f   : > { %s2897_s25 = sshll.u32 %s3958_s19, 2 }
  0x20   : > { %s375_s12 = scalar_lea.vmem %s4222_s1, %s2897_s25 }
  0x21   : > { %447 = vrot.lane.b32.xlu1 %v3416_v8, %s3286_s21  ;;  %550 = vrot.lane.b32.xlu0 %v3414_v7, %s3285_s20 }
  0x25   : > { %455 = vrot.lane.b32.xlu1 %v3414_v7, %s3286_s21  ;;  %453 = vrot.lane.b32.xlu0 %v3384_v1, %s3286_s21 }
  0x29   : > { %556 = vrot.lane.b32.xlu1 %v3434_v10, %s3285_s20  ;;  %554 = vrot.lane.b32.xlu0 %v3431_v9, %s3285_s20 }
  0x2d   : > { %459 = vrot.lane.b32.xlu1 %v3431_v9, %s3286_s21  ;;  %457 = vrot.lane.b32.xlu0 %v3405_v4, %s3286_s21 }
  0x31   : > { %560 = vrot.lane.b32.xlu1 %v3445_v13, %s3285_s20  ;;  %558 = vrot.lane.b32.xlu0 %v3449_v14, %s3285_s20 }
  0x35   : > { %463 = vrot.lane.b32.xlu1 %v3449_v14, %s3286_s21  ;;  %461 = vrot.lane.b32.xlu0 %v3434_v10, %s3286_s21 }
  0x39   : > { %465 = vrot.lane.b32.xlu1 %v3445_v13, %s3286_s21  ;;  %542 = vrot.lane.b32.xlu0 %v3416_v8, %s3285_s20  ;;  %s384_s21 = scalar_lea.vmem %s4223_s2, %s3958_s19 }
  0x3d   : > { %1887 = vperm.xlu0 %3222, %v1881_v16   ;;  %1892 = vperm.xlu1 %3223, %v1882_v17  }
  0x41   : > { %1897 = vperm.xlu1 %3223, %v1883_v20   ;;  %1902 = vperm.xlu0 %3222, %v1884_v21  }
  0x45   : > { %1973 = vperm.xlu1 %3223, %v1970_v26  }
  0x87   : > { %v549_v23 = vpop.permute.xlu0 %548  ;;  %v450_v24 = vpop.permute.xlu1 %449 }
  0x8b   : > { %v3499_v30 = vpop.permute.xlu0 %544  ;;  %v452_v31 = vpop.permute.xlu1 %451 }
  0x8c   : > { %v477_v34 = vsel %vm469_vm0, %v450_v24, %v452_v31 }
  0x8d   : > { %v534_v41 = vmul.f32 %v493_v32, %v477_v34  ;;  %v598_v32 = vrot.slane %v3494_v28, %v3550_v62  ;;  %v602_v34 = vrot.slane %v3494_v28, %v3553_v63 }
  0x8f   : > { %v553_v38 = vpop.permute.xlu1 %552  ;;  %v547_v39 = vpop.permute.xlu0 %546  ;;  %v690_v58 = vsel %vm687_vm2, %v534_v41, %v639_v40 }
  0x90   : > { %v569_v42 = vsel %vm562_vm1, %v547_v39, %v549_v23  ;;  %v570_v43 = vsel %vm562_vm1, %v3499_v30, %v547_v39 }
  0x91   : > { %v627_v44 = vmul.f32 %v586_v35, %v569_v42  ;;  %v626_v48 = vmul.f32 %v582_v37, %v570_v43  ;;  %v3580_v37 = vld [vmem:[%s4225_s4 + $0x20] sm:$0xff] }
  0x93   : > { %v669_v50 = vrot.slane %v627_v44, 2  ;;  %v3529_v51 = vpop.permute.xlu1 %447  ;;  %v551_v52 = vpop.permute.xlu0 %550  ;;  %v668_v2 = vrot.slane %v626_v48, 2 }
  0x94   : > { %v478_v55 = vsel %vm469_vm0, %v3529_v51, %v450_v24  ;;  %v567_v56 = vsel %vm562_vm1, %v551_v52, %v553_v38  ;;  %v568_v57 = vsel %vm562_vm1, %v549_v23, %v551_v52  ;;  %v642_v52 = vrot.slane %v3405_v4, 5 }
  0x95   : > { %v533_v59 = vmul.f32 %v489_v45, %v478_v55  ;;  %v701_v60 = vsel %vm698_vm3, %v690_v58, %v669_v50  ;;  %v628_v3 = vmul.f32 %v590_v46, %v568_v57  ;;  %v629_v5 = vmul.f32 %v594_v47, %v567_v56  ;;  %v3615_v57 = vld [vmem:[%s4225_s4 + $0x28] sm:$0xff] }
  0x96   : > { %v3555_v6 = vpack.c.bf16 %v669_v50, %v701_v60  ;;  %v505_v46 = vrot.slane %v3488_v27, %v3550_v62  ;;  %v509_v47 = vrot.slane %v3488_v27, %v3553_v63 }
  0x97   : > { %v456_v15 = vpop.permute.xlu1 %455  ;;  %v454_v16 = vpop.permute.xlu0 %453  ;;  %v689_v17 = vsel %vm687_vm2, %v533_v59, %v638_v49  ;;  %v670_v7 = vrot.slane %v628_v3, 2  ;;  %v671_v26 = vrot.slane %v629_v5, 2  ;;  %v3636_v5 = vld [vmem:[%s4224_s3 + $0x10] ss:$2 sm:$0x3] }
  0x98   : > { %v475_v18 = vsel %vm469_vm0, %v454_v16, %v456_v15  ;;  %v476_v20 = vsel %vm469_vm0, %v452_v31, %v454_v16  ;;  %3007 = vmatprep.subr.msk.bf16.mxu0 %vm3545_vm6, %v3555_v6  ;;  %v700_v21 = vsel %vm698_vm3, %v689_v17, %v668_v2 }
  0x99   : > { %v535_v23 = vmul.f32 %v497_v53, %v476_v20  ;;  %v536_v1 = vmul.f32 %v501_v54, %v475_v18  ;;  %v3568_v24 = vpack.c.bf16 %v668_v2, %v700_v21  ;;  %v643_v53 = vrot.slane %v3431_v9, 5  ;;  %v3650_v18 = vld [vmem:[%s4225_s4 + $0x30] sm:$0xff] }
  0x9a   : > { %v3606_v54 = vsub.s32 0, %v3469_v19 }
  0x9b   : > { %v557_v35 = vpop.permute.xlu1 %556  ;;  %v555_v31 = vpop.permute.xlu0 %554  ;;  %3010 = vmatpush1.bf16.msk.msra.mxu0 %vm3545_vm6, %v3568_v24  ;;  %v692_v39 = vsel %vm687_vm2, %v536_v1, %v641_v12  ;;  %v691_v40 = vsel %vm687_vm2, %v535_v23, %v640_v11 }
  0x9c   : > { %v565_v41 = vsel %vm562_vm1, %v555_v31, %v557_v35  ;;  %v566_v42 = vsel %vm562_vm1, %v553_v38, %v555_v31  ;;  %v703_v43 = vsel %vm698_vm3, %v692_v39, %v671_v26  ;;  %v702_v44 = vsel %vm698_vm3, %v691_v40, %v670_v7 }
  0x9d   : > { %v3590_v45 = vpack.c.bf16 %v671_v26, %v703_v43  ;;  %v3596_v48 = vpack.c.bf16 %v670_v7, %v702_v44  ;;  %v630_v49 = vmul.f32 %v598_v32, %v566_v42  ;;  %v631_v50 = vmul.f32 %v602_v34, %v565_v41  ;;  %v3682_v42 = vld [vmem:[%s4225_s4 + $0x38] sm:$0xff] }
  0x9e   : > { %2915 = vmatmul.mubr.msk.f32.vlgmr.msra.gmra.mrb[0].mxu0 %vm718_vm7, %v3580_v37  ;;  %v3601_v38 = vsub.s32 7, %v3469_v19  ;;  %v3627_v19 = vld [vmem:[%s4224_s3 + $0x11] ss:$2 sm:$0x3]  ;;  %v517_v32 = vrot.slane %v3636_v5, %v3606_v54  ;;  %v645_v39 = vrot.slane %v3449_v14, 5 }
  0x9f   : > { %v460_v55 = vpop.permute.xlu1 %459  ;;  %3013 = vmatprep.subr.msk.bf16.mxu1 %vm3545_vm6, %v3590_v45  ;;  %v458_v56 = vpop.permute.xlu0 %457  ;;  %818 = vmatprep.mubr.f32.mxu0 %v3284_v0  ;;  %v672_v60 = vrot.slane %v630_v49, 2  ;;  %v673_v2 = vrot.slane %v631_v50, 2  ;;  %v610_v16 = vrot.slane %v3627_v19, %v3606_v54  ;;  %v578_v50 = vrot.slane %v3494_v28, %v3606_v54 }
  0xa0   : > { %v473_v4 = vsel %vm469_vm0, %v458_v56, %v460_v55  ;;  %v474_v9 = vsel %vm469_vm0, %v456_v15, %v458_v56  ;;  %3016 = vmatpush1.bf16.msk.msra.mxu1 %vm3545_vm6, %v3596_v48  ;;  %v606_v3 = vrot.slane %v3494_v28, %v3601_v38  ;;  %v513_v23 = vrot.slane %v3488_v27, %v3601_v38 }
  0xa1   : > { %v537_v58 = vmul.f32 %v505_v46, %v474_v9  ;;  %v538_v59 = vmul.f32 %v509_v47, %v473_v4  ;;  %v485_v47 = vrot.slane %v3488_v27, %v3606_v54 }
  0xa2   : > { %2916 = vmatmul.mubr.msk.f32.gmra.mrb[2].mxu0 %vm718_vm7, %v3615_v57 }
  0xa3   : > { %v693_v11 = vsel %vm687_vm2, %v537_v58, %v642_v52  ;;  %v694_v12 = vsel %vm687_vm2, %v538_v59, %v643_v53  ;;  %v3640_v15 = vpop.permute.xlu1 %560  ;;  %2921 = vmatmul.mubr.msk.f32.vlgmr.msra.gmra.mrb[0].mxu1 %vm718_vm7, %v3580_v37  ;;  %v559_v17 = vpop.permute.xlu0 %558  ;;  %824 = vmatprep.mubr.f32.mxu0 %v3284_v0  ;;  %v637_v52 = vrot.slane %v3416_v8, 5 }
  0xa4   : > { %v704_v20 = vsel %vm698_vm3, %v693_v11, %v672_v60  ;;  %v564_v21 = vsel %vm562_vm1, %v557_v35, %v559_v17  ;;  %907 = vmatprep.mubr.f32.mxu1 %v3284_v0  ;;  %v705_v1 = vsel %vm698_vm3, %v694_v12, %v673_v2  ;;  %v563_v26 = vsel %vm562_vm1, %v559_v17, %v3640_v15  ;;  %v711_v12 = vld [vmem:[%s4225_s4 + $0x10] sm:$0xff] }
  0xa5   : > { %v3659_v7 = vpack.c.bf16 %v672_v60, %v704_v20  ;;  %v3666_v34 = vpack.c.bf16 %v673_v2, %v705_v1  ;;  %v632_v31 = vmul.f32 %v606_v3, %v564_v21  ;;  %v644_v35 = vrot.slane %v3434_v10, 5  ;;  %v2963_v1 = vld [vmem:[%s4225_s4 + $0x50] sm:$0xff] }
  0xa6   : > { %2917 = vmatmul.mubr.msk.f32.gmra.mrb[4].mxu0 %vm718_vm7, %v3650_v18  ;;  %v633_v43 = vmul.f32 %v610_v16, %v563_v26  ;;  %v614_v16 = vrot.slane %v3627_v19, %v3497_v29 }
  0xa7   : > { %v3672_v40 = vpop.permute.xlu1 %463  ;;  %2922 = vmatmul.mubr.msk.f32.gmra.mrb[2].mxu1 %vm718_vm7, %v3615_v57  ;;  %v462_v41 = vpop.permute.xlu0 %461  ;;  %3019 = vmatprep.subr.msk.bf16.mxu0 %vm3545_vm6, %v3666_v34  ;;  %v674_v49 = vrot.slane %v632_v31, 2 }
  0xa8   : > { %v471_v10 = vsel %vm469_vm0, %v462_v41, %v3672_v40  ;;  %v472_v14 = vsel %vm469_vm0, %v460_v55, %v462_v41  ;;  %3022 = vmatpush1.bf16.msk.msra.mxu0 %vm3545_vm6, %v3659_v7  ;;  %830 = vmatprep.mubr.f32.mxu0 %v3284_v0  ;;  %v675_v27 = vrot.slane %v633_v43, 2 }
  0xa9   : > { %v539_v44 = vmul.f32 %v513_v23, %v472_v14  ;;  %v540_v46 = vmul.f32 %v517_v32, %v471_v10  ;;  %3031 = vmatprep.subr.msk.bf16.mxu0 %vm3545_vm6, %v3568_v24  ;;  %913 = vmatprep.mubr.f32.mxu1 %v3284_v0 }
  0xaa   : > { %2918 = vmatmul.mubr.msk.f32.gmra.mrb[6].mxu0 %vm718_vm7, %v3682_v42 }
  0xab   : > { %v695_v53 = vsel %vm687_vm2, %v539_v44, %v644_v35  ;;  %v696_v55 = vsel %vm687_vm2, %v540_v46, %v645_v39  ;;  %v466_v56 = vpop.permute.xlu1 %465  ;;  %2923 = vmatmul.mubr.msk.f32.gmra.mrb[4].mxu1 %vm718_vm7, %v3650_v18  ;;  %v543_v24 = vpop.permute.xlu0 %542  ;;  %990 = vmatprep.mubr.f32.mxu0 %v3284_v0 }
  0xac   : > { %v706_v4 = vsel %vm698_vm3, %v695_v53, %v674_v49  ;;  %v479_v28 = vsel %vm469_vm0, %v466_v56, %v3529_v51  ;;  %v571_v8 = vsel %vm562_vm1, %v543_v24, %v3499_v30  ;;  %919 = vmatprep.mubr.f32.mxu1 %v3284_v0  ;;  %v707_v60 = vsel %vm698_vm3, %v696_v55, %v675_v27 }
  0xad   : > { %v532_v9 = vmul.f32 %v485_v47, %v479_v28  ;;  %v3717_v58 = vpack.c.bf16 %v674_v49, %v706_v4  ;;  %v625_v59 = vmul.f32 %v578_v50, %v571_v8  ;;  %v3725_v51 = vpack.c.bf16 %v675_v27, %v707_v60 }
  0xae   : > { %2927 = vmatmul.mubr.msk.f32.vlgmr.msra.gmra.mrb[8].mxu0 %vm718_vm7, %v3580_v37  ;;  %v572_v17 = vsel %vm562_vm1, %v3640_v15, %v543_v24  ;;  %v470_v19 = vsel %vm469_vm0, %v3672_v40, %v466_v56  ;;  %v646_v15 = vrot.slane %v3445_v13, 5 }
  0xaf   : > { %v688_v2 = vsel %vm687_vm2, %v532_v9, %v637_v52  ;;  %2924 = vmatmul.mubr.msk.f32.gmra.mrb[6].mxu1 %vm718_vm7, %v3682_v42  ;;  %996 = vmatprep.mubr.f32.mxu0 %v3284_v0  ;;  %v667_v30 = vrot.slane %v625_v59, 2 }
  0xb0   : > { %1079 = vmatprep.mubr.f32.mxu1 %v3284_v0  ;;  %3025 = vmatprep.subr.msk.bf16.mxu1 %vm3545_vm6, %v3725_v51 }
  0xb1   : > { %v699_v3 = vsel %vm698_vm3, %v688_v2, %v667_v30  ;;  %3028 = vmatpush1.bf16.msk.msra.mxu1 %vm3545_vm6, %v3717_v58 }
  0xb2   : > { %2928 = vmatmul.mubr.msk.f32.gmra.mrb[10].mxu0 %vm718_vm7, %v3615_v57  ;;  %v3032_v11 = vpack.c.bf16 %v667_v30, %v699_v3  ;;  %3037 = vmatprep.subr.msk.bf16.mxu1 %vm3545_vm6, %v3596_v48 }
  0xb3   : > { %1002 = vmatprep.mubr.f32.mxu0 %v3284_v0 }
  0xb4   : > { %2933 = vmatmul.mubr.msk.f32.vlgmr.msra.gmra.mrb[8].mxu1 %vm718_vm7, %v3580_v37  ;;  %3034 = vmatpush1.bf16.msk.msra.mxu0 %vm3545_vm6, %v3032_v11  ;;  %v709_v37 = vld [vmem:[%s4225_s4] sm:$0xff] }
  0xb5   : > { %3040 = vmatpush1.bf16.msk.msra.mxu1 %vm3545_vm6, %v3555_v6  ;;  %3043 = vmatprep.subr.msk.bf16.mxu0 %vm3545_vm6, %v3659_v7 }
  0xb6   : > { %3049 = vmatprep.subr.msk.bf16.mxu1 %vm3545_vm6, %v3717_v58  ;;  %2929 = vmatmul.mubr.msk.f32.gmra.mrb[12].mxu0 %vm718_vm7, %v3650_v18 }
  0xb7   : > { %1085 = vmatprep.mubr.f32.mxu1 %v3284_v0  ;;  %1008 = vmatprep.mubr.f32.mxu0 %v3284_v0 }
  0xb8   : > { %2934 = vmatmul.mubr.msk.f32.gmra.mrb[10].mxu1 %vm718_vm7, %v3615_v57  ;;  %v710_v57 = vld [vmem:[%s4225_s4 + $0x8] sm:$0xff] }
  0xb9   : > { %1091 = vmatprep.mubr.f32.mxu1 %v3284_v0 }
  0xba   : > { %2930 = vmatmul.mubr.msk.f32.gmra.mrb[14].mxu0 %vm718_vm7, %v3682_v42 }
  0xbb   : > { %1182 = vmatprep.mubr.f32.mxu0 %v3284_v0 }
  0xbc   : > { %2935 = vmatmul.mubr.msk.f32.gmra.mrb[12].mxu1 %vm718_vm7, %v3650_v18  ;;  %v634_v18 = vmul.f32 %v614_v16, %v572_v17  ;;  %v3901_v61 = vpop.permute.xlu0 %1887 }
  0xbd   : > { %1097 = vmatprep.mubr.f32.mxu1 %v3284_v0 }
  0xbe   : > { %2939 = vmatmul.mubr.msk.f32.vlgmr.msra.gmra.mrb[0].mxu0 %vm718_vm7, %v709_v37  ;;  %v676_v22 = vrot.slane %v634_v18, 2 }
  0xbf   : > { %3046 = vmatpush1.bf16.msk.msra.mxu0 %vm3545_vm6, %v3590_v45  ;;  %1188 = vmatprep.mubr.f32.mxu0 %v3284_v0 }
  0xc0   : > { %2936 = vmatmul.mubr.msk.f32.gmra.mrb[14].mxu1 %vm718_vm7, %v3682_v42  ;;  %3055 = vmatprep.subr.msk.bf16.mxu0 %vm3545_vm6, %v3596_v48  ;;  %v521_v48 = vrot.slane %v3636_v5, %v3497_v29  ;;  %v712_v5 = vld [vmem:[%s4225_s4 + $0x18] sm:$0xff]  ;;  %v3913_v4 = vpop.permute.xlu0 %1902 }
  0xc1   : > { %1271 = vmatprep.mubr.f32.mxu1 %v3284_v0 }
  0xc2   : > { %2940 = vmatmul.mubr.msk.f32.gmra.mrb[2].mxu0 %vm718_vm7, %v710_v57  ;;  %v541_v20 = vmul.f32 %v521_v48, %v470_v19 }
  0xc3   : > { %1194 = vmatprep.mubr.f32.mxu0 %v3284_v0 }
  0xc4   : > { %2945 = vmatmul.mubr.msk.f32.vlgmr.msra.gmra.mrb[0].mxu1 %vm718_vm7, %v709_v37  ;;  %v697_v21 = vsel %vm687_vm2, %v541_v20, %v646_v15 }
  0xc5   : > { %3052 = vmatpush1.bf16.msk.msra.mxu1 %vm3545_vm6, %v3666_v34  ;;  %1277 = vmatprep.mubr.f32.mxu1 %v3284_v0  ;;  %v708_v13 = vsel %vm698_vm3, %v697_v21, %v676_v22 }
  0xc6   : > { %3061 = vmatprep.subr.msk.bf16.mxu1 %vm3545_vm6, %v3659_v7  ;;  %2941 = vmatmul.mubr.msk.f32.gmra.mrb[4].mxu0 %vm718_vm7, %v711_v12  ;;  %v3071_v23 = vpack.c.bf16 %v676_v22, %v708_v13  ;;  %v2964_v7 = vld [vmem:[%s4225_s4 + $0x58] sm:$0xff] }
  0xc7   : > { %1200 = vmatprep.mubr.f32.mxu0 %v3284_v0 }
  0xc8   : > { %2946 = vmatmul.mubr.msk.f32.gmra.mrb[2].mxu1 %vm718_vm7, %v710_v57 }
  0xc9   : > { %1283 = vmatprep.mubr.f32.mxu1 %v3284_v0 }
  0xca   : > { %2942 = vmatmul.mubr.msk.f32.gmra.mrb[6].mxu0 %vm718_vm7, %v712_v5 }
  0xcb   : > { %1360 = vmatprep.mubr.f32.mxu0 %v3284_v0 }
  0xcc   : > { %2947 = vmatmul.mubr.msk.f32.gmra.mrb[4].mxu1 %vm718_vm7, %v711_v12 }
  0xcd   : > { %1289 = vmatprep.mubr.f32.mxu1 %v3284_v0 }
  0xce   : > { %2951 = vmatmul.mubr.msk.f32.vlgmr.msra.gmra.mrb[8].mxu0 %vm718_vm7, %v709_v37 }
  0xcf   : > { %3058 = vmatpush1.bf16.msk.msra.mxu0 %vm3545_vm6, %v3555_v6  ;;  %1366 = vmatprep.mubr.f32.mxu0 %v3284_v0  ;;  %v2961_v6 = vld [vmem:[%s4225_s4 + $0x40] sm:$0xff] }
  0xd0   : > { %2948 = vmatmul.mubr.msk.f32.gmra.mrb[6].mxu1 %vm718_vm7, %v712_v5  ;;  %3067 = vmatprep.subr.msk.bf16.mxu0 %vm3545_vm6, %v3717_v58 }
  0xd1   : > { %1449 = vmatprep.mubr.f32.mxu1 %v3284_v0 }
  0xd2   : > { %2952 = vmatmul.mubr.msk.f32.gmra.mrb[10].mxu0 %vm718_vm7, %v710_v57 }
  0xd3   : > { %1372 = vmatprep.mubr.f32.mxu0 %v3284_v0 }
  0xd4   : > { %2957 = vmatmul.mubr.msk.f32.vlgmr.msra.gmra.mrb[8].mxu1 %vm718_vm7, %v709_v37 }
  0xd5   : > { %3064 = vmatpush1.bf16.msk.msra.mxu1 %vm3545_vm6, %v3590_v45  ;;  %1455 = vmatprep.mubr.f32.mxu1 %v3284_v0  ;;  %v2962_v45 = vld [vmem:[%s4225_s4 + $0x48] sm:$0xff] }
  0xd6   : > { %3073 = vmatprep.subr.msk.bf16.mxu1 %vm3545_vm6, %v3071_v23  ;;  %2953 = vmatmul.mubr.msk.f32.gmra.mrb[12].mxu0 %vm718_vm7, %v711_v12 }
  0xd7   : > { %1378 = vmatprep.mubr.f32.mxu0 %v3284_v0 }
  0xd8   : > { %2958 = vmatmul.mubr.msk.f32.gmra.mrb[10].mxu1 %vm718_vm7, %v710_v57 }
  0xd9   : > { %1461 = vmatprep.mubr.f32.mxu1 %v3284_v0 }
  0xda   : > { %2954 = vmatmul.mubr.msk.f32.gmra.mrb[14].mxu0 %vm718_vm7, %v712_v5 }
  0xdb   : > { %1557 = vmatprep.mubr.f32.mxu0 %v3284_v0 }
  0xdc   : > { %2959 = vmatmul.mubr.msk.f32.gmra.mrb[12].mxu1 %vm718_vm7, %v711_v12 }
  0xdd   : > { %1467 = vmatprep.mubr.f32.mxu1 %v3284_v0 }
  0xde   : > { %2967 = vmatmul.mubr.msk.f32.vlgmr.msra.gmra.mrb[0].mxu0 %vm718_vm7, %v2961_v6 }
  0xdf   : > { %3070 = vmatpush1.bf16.msk.msra.mxu0 %vm3545_vm6, %v3666_v34  ;;  %1563 = vmatprep.mubr.f32.mxu0 %v3284_v0  ;;  %v3903_v34 = vpop.permute.xlu1 %1892 }
  0xe0   : > { %2960 = vmatmul.mubr.msk.f32.gmra.mrb[14].mxu1 %vm718_vm7, %v712_v5 }
  0xe1   : > { %1646 = vmatprep.mubr.f32.mxu1 %v3284_v0 }
  0xe2   : > { %2968 = vmatmul.mubr.msk.f32.gmra.mrb[2].mxu0 %vm718_vm7, %v2962_v45 }
  0xe3   : > { %1569 = vmatprep.mubr.f32.mxu0 %v3284_v0  ;;  %v3909_v49 = vpop.permute.xlu1 %1897 }
  0xe4   : > { %2973 = vmatmul.mubr.msk.f32.vlgmr.msra.gmra.mrb[0].mxu1 %vm718_vm7, %v2961_v6 }
  0xe5   : > { %3076 = vmatpush1.bf16.msk.msra.mxu1 %vm3545_vm6, %v3725_v51  ;;  %1652 = vmatprep.mubr.f32.mxu1 %v3284_v0 }
  0xe6   : > { %2969 = vmatmul.mubr.msk.f32.gmra.mrb[4].mxu0 %vm718_vm7, %v2963_v1 }
  0xe7   : > { %1575 = vmatprep.mubr.f32.mxu0 %v3284_v0 }
  0xe8   : > { %2974 = vmatmul.mubr.msk.f32.gmra.mrb[2].mxu1 %vm718_vm7, %v2962_v45 }
  0xe9   : > { %1658 = vmatprep.mubr.f32.mxu1 %v3284_v0 }
  0xea   : > { %2970 = vmatmul.mubr.msk.f32.gmra.mrb[6].mxu0 %vm718_vm7, %v2964_v7 }
  0xeb   : > { %1735 = vmatprep.mubr.f32.mxu0 %v3284_v0 }
  0xec   : > { %2975 = vmatmul.mubr.msk.f32.gmra.mrb[4].mxu1 %vm718_vm7, %v2963_v1 }
  0xed   : > { %1664 = vmatprep.mubr.f32.mxu1 %v3284_v0 }
  0xee   : > { %2979 = vmatmul.mubr.msk.f32.vlgmr.msra.gmra.mrb[8].mxu0 %vm718_vm7, %v2961_v6 }
  0xef   : > { %1741 = vmatprep.mubr.f32.mxu0 %v3284_v0 }
  0xf0   : > { %2976 = vmatmul.mubr.msk.f32.gmra.mrb[6].mxu1 %vm718_vm7, %v2964_v7 }
  0xf1   : > { %1824 = vmatprep.mubr.f32.mxu1 %v3284_v0 }
  0xf2   : > { %2980 = vmatmul.mubr.msk.f32.gmra.mrb[10].mxu0 %vm718_vm7, %v2962_v45 }
  0xf3   : > { %1747 = vmatprep.mubr.f32.mxu0 %v3284_v0 }
  0xf4   : > { %2985 = vmatmul.mubr.msk.f32.vlgmr.msra.gmra.mrb[8].mxu1 %vm718_vm7, %v2961_v6 }
  0xf5   : > { %1830 = vmatprep.mubr.f32.mxu1 %v3284_v0 }
  0xf6   : > { %2981 = vmatmul.mubr.msk.f32.gmra.mrb[12].mxu0 %vm718_vm7, %v2963_v1 }
  0xf7   : > { %1753 = vmatprep.mubr.f32.mxu0 %v3284_v0 }
  0xf8   : > { %2986 = vmatmul.mubr.msk.f32.gmra.mrb[10].mxu1 %vm718_vm7, %v2962_v45 }
  0xf9   : > { %1836 = vmatprep.mubr.f32.mxu1 %v3284_v0 }
  0xfa   : > { %2982 = vmatmul.mubr.msk.f32.gmra.mrb[14].mxu0 %vm718_vm7, %v2964_v7 }
  0xfb   : > { %2044 = vmatprep.mubr.f32.mxu0 %v3284_v0 }
  0xfc   : > { %2987 = vmatmul.mubr.msk.f32.gmra.mrb[12].mxu1 %vm718_vm7, %v2963_v1 }
  0xfd   : > { %1842 = vmatprep.mubr.f32.mxu1 %v3284_v0 }
 0x100   : > { %2988 = vmatmul.mubr.msk.f32.gmra.mrb[14].mxu1 %vm718_vm7, %v2964_v7 }
 0x101   : > { %2115 = vmatprep.mubr.f32.mxu1 %v3284_v0 }
 0x1b1   : > { %v1559_v26 = vpop.f32.mrb[0].mxu0 }
 0x1b2   : > { %v1561_v32 = vpop.f32.mrb[1].mxu0  ;;  %v1905_v31 = vadd.f32 %v3901_v61, %v1559_v26 }
 0x1b3   : > { %v1906_v35 = vadd.f32 %v3901_v61, %v1561_v32 }
 0x1b4   : > { %v1937_v10 = vmax.f32 %v1905_v31, 0.0 }
 0x1b5   : > { %v1565_v39 = vpop.f32.mrb[2].mxu0  ;;  %v1938_v46 = vmax.f32 %v1906_v35, 0.0 }
 0x1b6   : > { %v1913_v40 = vadd.f32 %v3903_v34, %v1565_v39  ;;  %v1567_v41 = vpop.f32.mrb[3].mxu0 }
 0x1b7   : > { %v1914_v42 = vadd.f32 %v3903_v34, %v1567_v41  ;;  %v1648_v43 = vpop.f32.mrb[0].mxu1 }
 0x1b8   : > { %v1945_v14 = vmax.f32 %v1913_v40, 0.0  ;;  %v1650_v44 = vpop.f32.mrb[1].mxu1  ;;  %v1907_v53 = vadd.f32 %v3901_v61, %v1648_v43  ;;  %v3931_v43 = vld [vmem:[%s4227_s6] sm:$0x7] }
 0x1b9   : > { %v1946_v47 = vmax.f32 %v1914_v42, 0.0  ;;  %v1571_v50 = vpop.f32.mrb[4].mxu0  ;;  %v1908_v24 = vadd.f32 %v3901_v61, %v1650_v44 }
 0x1ba   : > { %v3079_v52 = vpack.c.bf16 %v1945_v14, %v1937_v10  ;;  %v1573_v55 = vpop.f32.mrb[5].mxu0  ;;  %v1921_v28 = vadd.f32 %v3909_v49, %v1571_v50  ;;  %v1939_v2 = vmax.f32 %v1907_v53, 0.0 }
 0x1bb   : > { %v3077_v56 = vpack.c.bf16 %v1946_v47, %v1938_v46  ;;  %v1654_v27 = vpop.f32.mrb[2].mxu1  ;;  %v1922_v58 = vadd.f32 %v3909_v49, %v1573_v55  ;;  %v1940_v11 = vmax.f32 %v1908_v24, 0.0 }
 0x1bc   : > { %v1915_v8 = vadd.f32 %v3903_v34, %v1654_v27  ;;  %v1656_v9 = vpop.f32.mrb[3].mxu1  ;;  %v1953_v16 = vmax.f32 %v1921_v28, 0.0 }
 0x1bd   : > { %v1916_v59 = vadd.f32 %v3903_v34, %v1656_v9  ;;  %v1577_v60 = vpop.f32.mrb[6].mxu0  ;;  %3078 = vmatprep.subr.bf16.mxu0 %v3077_v56  ;;  %v1954_v5 = vmax.f32 %v1922_v58, 0.0 }
 0x1be   : > { %v1947_v51 = vmax.f32 %v1915_v8, 0.0  ;;  %v1929_v30 = vadd.f32 %v3913_v4, %v1577_v60  ;;  %v1579_v3 = vpop.f32.mrb[7].mxu0  ;;  %3080 = vmatpush1.bf16.msra.mxu0 %v3079_v52 }
 0x1bf   : > { %v1948_v37 = vmax.f32 %v1916_v59, 0.0  ;;  %v1930_v57 = vadd.f32 %v3913_v4, %v1579_v3  ;;  %v1660_v12 = vpop.f32.mrb[4].mxu1 }
 0x1c0   : > { %v3087_v48 = vpack.c.bf16 %v1947_v51, %v1939_v2  ;;  %v1961_v17 = vmax.f32 %v1929_v30, 0.0  ;;  %v1662_v19 = vpop.f32.mrb[5].mxu1  ;;  %v1923_v21 = vadd.f32 %v3909_v49, %v1660_v12 }
 0x1c1   : > { %v3085_v18 = vpack.c.bf16 %v1948_v37, %v1940_v11  ;;  %v1962_v15 = vmax.f32 %v1930_v57, 0.0  ;;  %v1737_v20 = vpop.f32.mrb[8].mxu0  ;;  %v1924_v6 = vadd.f32 %v3909_v49, %v1662_v19 }
 0x1c2   : > { %v3083_v22 = vpack.c.bf16 %v1961_v17, %v1953_v16  ;;  %v1739_v13 = vpop.f32.mrb[9].mxu0  ;;  %v1909_v1 = vadd.f32 %v3901_v61, %v1737_v20  ;;  %v1955_v39 = vmax.f32 %v1923_v21, 0.0 }
 0x1c3   : > { %v3081_v23 = vpack.c.bf16 %v1962_v15, %v1954_v5  ;;  %v1666_v45 = vpop.f32.mrb[6].mxu1  ;;  %3086 = vmatprep.subr.bf16.mxu1 %v3085_v18  ;;  %v1910_v32 = vadd.f32 %v3901_v61, %v1739_v13  ;;  %v1956_v10 = vmax.f32 %v1924_v6, 0.0 }
 0x1c4   : > { %v1931_v7 = vadd.f32 %v3913_v4, %v1666_v45  ;;  %v1668_v26 = vpop.f32.mrb[7].mxu1  ;;  %3088 = vmatpush1.bf16.msra.mxu1 %v3087_v48  ;;  %v1941_v47 = vmax.f32 %v1909_v1, 0.0 }
 0x1c5   : > { %v1932_v31 = vadd.f32 %v3913_v4, %v1668_v26  ;;  %v1743_v35 = vpop.f32.mrb[10].mxu0  ;;  %3082 = vmatprep.subr.bf16.mxu0 %v3081_v23  ;;  %v1942_v55 = vmax.f32 %v1910_v32, 0.0 }
 0x1c6   : > { %v1963_v40 = vmax.f32 %v1931_v7, 0.0  ;;  %v1917_v41 = vadd.f32 %v3903_v34, %v1743_v35  ;;  %v1745_v42 = vpop.f32.mrb[11].mxu0  ;;  %3084 = vmatpush1.bf16.msra.mxu0 %v3083_v22 }
 0x1c7   : > { %v1964_v14 = vmax.f32 %v1932_v31, 0.0  ;;  %v1918_v44 = vadd.f32 %v3903_v34, %v1745_v42  ;;  %v1826_v46 = vpop.f32.mrb[8].mxu1 }
 0x1c8   : > { %v3091_v50 = vpack.c.bf16 %v1963_v40, %v1955_v39  ;;  %v1949_v52 = vmax.f32 %v1917_v41, 0.0  ;;  %v1828_v53 = vpop.f32.mrb[9].mxu1  ;;  %v1911_v8 = vadd.f32 %v3901_v61, %v1826_v46 }
 0x1c9   : > { %v3089_v56 = vpack.c.bf16 %v1964_v14, %v1956_v10  ;;  %v1950_v24 = vmax.f32 %v1918_v44, 0.0  ;;  %v1749_v27 = vpop.f32.mrb[12].mxu0  ;;  %2989 = vmatmul.mubr.msk.f32.vlgmr.msra.gmra.mrb[16].mxu0 %vm1976_vm8, %v3931_v43  ;;  %v1912_v59 = vadd.f32 %v3901_v61, %v1828_v53 }
 0x1ca   : > { %v3095_v28 = vpack.c.bf16 %v1949_v52, %v1941_v47  ;;  %v1751_v9 = vpop.f32.mrb[13].mxu0  ;;  %2186 = vmatprep.mubr.f32.mxu0 %v3284_v0  ;;  %v1925_v2 = vadd.f32 %v3909_v49, %v1749_v27  ;;  %v1943_v57 = vmax.f32 %v1911_v8, 0.0 }
 0x1cb   : > { %v3093_v58 = vpack.c.bf16 %v1950_v24, %v1942_v55  ;;  %v1832_v60 = vpop.f32.mrb[10].mxu1  ;;  %3090 = vmatprep.subr.bf16.mxu1 %v3089_v56  ;;  %v1926_v3 = vadd.f32 %v3909_v49, %v1751_v9  ;;  %v1944_v61 = vmax.f32 %v1912_v59, 0.0 }
 0x1cc   : > { %v1919_v51 = vadd.f32 %v3903_v34, %v1832_v60  ;;  %v1834_v30 = vpop.f32.mrb[11].mxu1  ;;  %3092 = vmatpush1.bf16.msra.mxu1 %v3091_v50  ;;  %v1957_v18 = vmax.f32 %v1925_v2, 0.0 }
 0x1cd   : > { %v1920_v11 = vadd.f32 %v3903_v34, %v1834_v30  ;;  %v1755_v37 = vpop.f32.mrb[14].mxu0  ;;  %3094 = vmatprep.subr.bf16.mxu0 %v3093_v58  ;;  %v1958_v22 = vmax.f32 %v1926_v3, 0.0  ;;  %v4009_v3 = vld [vmem:[%s375_s12 + $0x8] sm:$0x77] }
 0x1ce   : > { %v1951_v12 = vmax.f32 %v1919_v51, 0.0  ;;  %v1933_v16 = vadd.f32 %v3913_v4, %v1755_v37  ;;  %v1757_v48 = vpop.f32.mrb[15].mxu0  ;;  %3096 = vmatpush1.bf16.msra.mxu0 %v3095_v28  ;;  %v2545_v37 = vmul.f32 %v4009_v3, %v4009_v3 }
 0x1cf   : > { %v1952_v17 = vmax.f32 %v1920_v11, 0.0  ;;  %v1934_v19 = vadd.f32 %v3913_v4, %v1757_v48  ;;  %v1838_v5 = vpop.f32.mrb[12].mxu1  ;;  %2990 = vmatmul.mubr.msk.f32.vlgmr.msra.gmra.mrb[16].mxu1 %vm1976_vm8, %v3931_v43 }
 0x1d0   : > { %v3103_v15 = vpack.c.bf16 %v1951_v12, %v1943_v57  ;;  %v1965_v20 = vmax.f32 %v1933_v16, 0.0  ;;  %v1840_v34 = vpop.f32.mrb[13].mxu1  ;;  %2257 = vmatprep.mubr.f32.mxu1 %v3284_v0  ;;  %v1927_v6 = vadd.f32 %v3909_v49, %v1838_v5  ;;  %v4013_v57 = vld [vmem:[%s375_s12 + $0x10] sm:$0x77]  ;;  %v2994_v16 = vrot.slane %v2545_v37, 9 }
 0x1d1   : > { %v3101_v21 = vpack.c.bf16 %v1952_v17, %v1944_v61  ;;  %v1966_v13 = vmax.f32 %v1934_v19, 0.0  ;;  %v1928_v1 = vadd.f32 %v3909_v49, %v1840_v34  ;;  %v2660_v49 = vld [vmem:[%s384_s21] sm:$0xff]  ;;  %v2546_v48 = vmul.f32 %v4013_v57, %v4013_v57 }
 0x1d2   : > { %v3099_v23 = vpack.c.bf16 %v1965_v20, %v1957_v18  ;;  %v1959_v35 = vmax.f32 %v1927_v6, 0.0  ;;  %vm2661_vm9 = vcmp.gt.f32.partialorder %v2660_v49, 0.0  ;;  %v2565_v19 = vadd.f32 %v2994_v16, %v2545_v37 }
 0x1d3   : > { %v3097_v45 = vpack.c.bf16 %v1966_v13, %v1958_v22  ;;  %v1844_v7 = vpop.f32.mrb[14].mxu1  ;;  %3102 = vmatprep.subr.bf16.mxu1 %v3101_v21  ;;  %v1960_v40 = vmax.f32 %v1928_v1, 0.0  ;;  %v2998_v5 = vrot.slane %v2545_v37, 10  ;;  %v2995_v18 = vrot.slane %v2546_v48, 9 }
 0x1d4   : > { %v1935_v26 = vadd.f32 %v3913_v4, %v1844_v7  ;;  %v1846_v32 = vpop.f32.mrb[15].mxu1  ;;  %3104 = vmatpush1.bf16.msra.mxu1 %v3103_v15  ;;  %v2999_v13 = vrot.slane %v2546_v48, 10 }
 0x1d5   : > { %v1936_v31 = vadd.f32 %v3913_v4, %v1846_v32  ;;  %3098 = vmatprep.subr.bf16.mxu0 %v3097_v45  ;;  %v3001_v4 = vsel %vm2661_vm9, 1.0, %v3284_v0  ;;  %v4021_v22 = vadd.f32 %v2998_v5, %v2565_v19  ;;  %v2566_v21 = vadd.f32 %v2995_v18, %v2546_v48 }
 0x1d6   : > { %v1967_v39 = vmax.f32 %v1935_v26, 0.0  ;;  %3100 = vmatpush1.bf16.msra.mxu0 %v3099_v23  ;;  %v3966_v14 = vrot.slane %v3001_v4, %v3606_v54  ;;  %v3972_v44 = vrot.slane %v3001_v4, %v3480_v25  ;;  %v3975_v46 = vrot.slane %v3001_v4, %v3512_v36  ;;  %v4023_v23 = vld [vmem:[%s375_s12 + $0x18] sm:$0x77] }
 0x1d7   : > { %v1968_v41 = vmax.f32 %v1936_v31, 0.0  ;;  %v3978_v47 = vrot.slane %v3001_v4, %v3504_v33  ;;  %v3987_v55 = vrot.slane %v3001_v4, %v3550_v62  ;;  %v3992_v24 = vrot.slane %v3001_v4, %v3553_v63 }
 0x1d8   : > { %v3107_v42 = vpack.c.bf16 %v1967_v39, %v1959_v35  ;;  %v2746_v50 = vsel %vm731_vm4, %v3966_v14, 0.0  ;;  %v2749_v52 = vsel %vm731_vm4, %v3972_v44, 0.0  ;;  %v2751_v36 = vsel %vm731_vm4, %v3975_v46, 0.0 }
 0x1d9   : > { %v3105_v10 = vpack.c.bf16 %v1968_v41, %v1960_v40  ;;  %2991 = vmatmul.mubr.msk.f32.vlgmr.msra.gmra.mrb[18].mxu0 %vm1976_vm8, %v3931_v43  ;;  %v2753_v27 = vsel %vm731_vm4, %v3978_v47, 0.0  ;;  %v3997_v8 = vrot.slane %v3001_v4, %v3601_v38  ;;  %v2755_v9 = vsel %vm731_vm4, %v3987_v55, 0.0  ;;  %v2264_v38 = vld [vmem:[%s375_s12] sm:$0x77] }
 0x1da   : > { %v2757_v59 = vsel %vm731_vm4, %v3992_v24, 0.0  ;;  %v2544_v11 = vmul.f32 %v2264_v38, %v2264_v38  ;;  %v2275_v15 = vrot.slane %v2264_v38, %v3606_v54  ;;  %v2323_v34 = vrot.slane %v2264_v38, %v3497_v29 }
 0x1db   : > { %3106 = vmatprep.subr.bf16.mxu1 %v3105_v10  ;;  %v2759_v2 = vsel %vm731_vm4, %v3997_v8, 0.0  ;;  %v2403_v6 = vrot.slane %v2264_v38, %v3480_v25  ;;  %v2279_v45 = vrot.slane %v2264_v38, %v3504_v33  ;;  %v2327_v1 = vrot.slane %v2264_v38, %v3550_v62 }
 0x1dc   : > { %3108 = vmatpush1.bf16.msra.mxu1 %v3107_v42  ;;  %v2993_v12 = vrot.slane %v2544_v11, 9  ;;  %v2997_v17 = vrot.slane %v2544_v11, 10  ;;  %v2407_v7 = vrot.slane %v2264_v38, %v3553_v63  ;;  %v2283_v26 = vrot.slane %v4009_v3, %v3606_v54 }
 0x1dd   : > { %v2331_v32 = vrot.slane %v4009_v3, %v3497_v29  ;;  %v2411_v31 = vrot.slane %v4009_v3, %v3480_v25  ;;  %v2287_v35 = vrot.slane %v4009_v3, %v3504_v33  ;;  %v2335_v40 = vrot.slane %v4009_v3, %v3550_v62 }
 0x1de   : > { %v2564_v61 = vadd.f32 %v2993_v12, %v2544_v11  ;;  %v2415_v41 = vrot.slane %v4009_v3, %v3553_v63  ;;  %v4045_v42 = vmul.f32 %v4023_v23, %v4023_v23  ;;  %v2599_v49 = vrot.slane %v4021_v22, %v3606_v54 }
 0x1df   : > { %2992 = vmatmul.mubr.msk.f32.vlgmr.msra.gmra.mrb[18].mxu1 %vm1976_vm8, %v3931_v43  ;;  %v3969_v43 = vrot.slane %v3001_v4, %v3497_v29 }
 0x1e0   : > { %v4018_v20 = vadd.f32 %v2997_v17, %v2564_v61  ;;  %v3000_v38 = vrot.slane %v4045_v42, 10 }
 0x1e1   : > { %v2747_v0 = vsel %vm731_vm4, %v3969_v43, 0.0 }
 0x1e2   : > { %v2748_v53 = vadd.f32 %v2747_v0, %v2746_v50  ;;  %v2591_v39 = vrot.slane %v4018_v20, %v3606_v54  ;;  %v2595_v10 = vrot.slane %v4018_v20, %v3504_v33  ;;  %v4053_v50 = vadd.f32 %v2999_v13, %v2566_v21 }
 0x1e3   : > { %v2291_v0 = vrot.slane %v4013_v57, %v3606_v54 }
 0x1e4   : > { %v2750_v56 = vadd.f32 %v2749_v52, %v2748_v53  ;;  %v2339_v52 = vrot.slane %v4013_v57, %v3497_v29  ;;  %v2419_v53 = vrot.slane %v4013_v57, %v3480_v25 }
 0x1e6   : > { %v2752_v28 = vadd.f32 %v2751_v36, %v2750_v56  ;;  %v2295_v36 = vrot.slane %v4013_v57, %v3504_v33  ;;  %v4063_v56 = vpop.permute.xlu1 %1973 }
 0x1e8   : > { %v2754_v58 = vadd.f32 %v2753_v27, %v2752_v28  ;;  %v2343_v28 = vrot.slane %v4013_v57, %v3550_v62 }
 0x1ea   : > { %v2756_v60 = vadd.f32 %v2755_v9, %v2754_v58 }
 0x1ec   : > { %v2758_v51 = vadd.f32 %v2757_v59, %v2756_v60 }
 0x1ee   : > { %v2760_v30 = vadd.f32 %v2759_v2, %v2758_v51 }
 0x1f0   : > { %2761 = vadd.xlane.f32.xlu1 %v2760_v30  ;;  %v2996_v30 = vrot.slane %v4045_v42, 9 }
 0x29c   : > { %v2046_v27 = vpop.f32.mrb[16].mxu0 }
 0x29d   : > { %v2047_v60 = vadd.f32 %v2046_v27, %v4063_v56  ;;  %v2048_v2 = vpop.f32.mrb[17].mxu0 }
 0x29e   : > { %v2049_v11 = vadd.f32 %v2048_v2, %v4063_v56  ;;  %v2567_v2 = vadd.f32 %v2996_v30, %v4045_v42 }
 0x29f   : > { %v2312_v48 = vmul.f32 %v2275_v15, %v2047_v60  ;;  %v2360_v61 = vmul.f32 %v2323_v34, %v2047_v60  ;;  %v2440_v17 = vmul.f32 %v2403_v6, %v2047_v60  ;;  %v2480_v19 = vmul.f32 %v2047_v60, %v2047_v60 }
 0x2a0   : > { %v2313_v5 = vmul.f32 %v2279_v45, %v2049_v11  ;;  %v2361_v18 = vmul.f32 %v2327_v1, %v2049_v11  ;;  %v2441_v20 = vmul.f32 %v2407_v7, %v2049_v11  ;;  %v2481_v21 = vmul.f32 %v2049_v11, %v2049_v11 }
 0x2a1   : > { %v2376_v13 = vrot.slane %v2360_v61, 1  ;;  %v2496_v27 = vrot.slane %v2480_v19, 1  ;;  %v2456_v51 = vrot.slane %v2440_v17, 2  ;;  %v2520_v59 = vrot.slane %v2480_v19, 2 }
 0x2a2   : > { %v2377_v12 = vrot.slane %v2361_v18, 1  ;;  %v2497_v37 = vrot.slane %v2481_v21, 1  ;;  %v2117_v58 = vpop.f32.mrb[16].mxu1  ;;  %v2457_v34 = vrot.slane %v2441_v20, 2  ;;  %v2521_v60 = vrot.slane %v2481_v21, 2 }
 0x2a3   : > { %v2392_v16 = vadd.f32 %v2376_v13, %v2312_v48  ;;  %v2512_v15 = vadd.f32 %v2496_v27, %v2480_v19  ;;  %v2118_v6 = vadd.f32 %v2117_v58, %v4063_v56  ;;  %v2119_v45 = vpop.f32.mrb[17].mxu1 }
 0x2a4   : > { %v2393_v1 = vadd.f32 %v2377_v12, %v2313_v5  ;;  %v2513_v7 = vadd.f32 %v2497_v37, %v2481_v21  ;;  %v2120_v11 = vadd.f32 %v2119_v45, %v4063_v56 }
 0x2a5   : > { %v4090_v61 = vadd.f32 %v2456_v51, %v2392_v16  ;;  %v2536_v30 = vadd.f32 %v2520_v59, %v2512_v15  ;;  %v2314_v42 = vmul.f32 %v2283_v26, %v2118_v6  ;;  %v2362_v17 = vmul.f32 %v2331_v32, %v2118_v6 }
 0x2a6   : > { %v4092_v9 = vadd.f32 %v2457_v34, %v2393_v1  ;;  %v2537_v18 = vadd.f32 %v2521_v60, %v2513_v7  ;;  %v2442_v4 = vmul.f32 %v2411_v31, %v2118_v6  ;;  %v2482_v48 = vmul.f32 %v2118_v6, %v2118_v6 }
 0x2a7   : > { %v2628_v19 = vmul.f32 %v2591_v39, %v2536_v30  ;;  %v2378_v20 = vrot.slane %v2362_v17, 1  ;;  %v2315_v58 = vmul.f32 %v2287_v35, %v2120_v11  ;;  %v2363_v37 = vmul.f32 %v2335_v40, %v2120_v11 }
 0x2a8   : > { %v2629_v51 = vmul.f32 %v2595_v10, %v2537_v18  ;;  %v2458_v12 = vrot.slane %v2442_v4, 2  ;;  %v2498_v59 = vrot.slane %v2482_v48, 1  ;;  %v4100_v26 = vadd.f32 %v3000_v38, %v2567_v2 }
 0x2a9   : > { %v2636_v32 = vmax.f32 %v2628_v19, 1e-12  ;;  %v2394_v16 = vadd.f32 %v2378_v20, %v2314_v42  ;;  %v2379_v5 = vrot.slane %v2363_v37, 1  ;;  %v2443_v31 = vmul.f32 %v2415_v41, %v2120_v11 }
 0x2aa   : > { %v2637_v39 = vmax.f32 %v2629_v51, 1e-12  ;;  %v2514_v21 = vadd.f32 %v2498_v59, %v2482_v48  ;;  %v2522_v13 = vrot.slane %v2482_v48, 2  ;;  %v2483_v35 = vmul.f32 %v2120_v11, %v2120_v11 }
 0x2ab   : > { %3228 = vrsqrt.f32 %v2636_v32  ;;  %v4105_v27 = vadd.f32 %v2458_v12, %v2394_v16  ;;  %v2395_v40 = vadd.f32 %v2379_v5, %v2315_v58  ;;  %v2459_v10 = vrot.slane %v2443_v31, 2 }
 0x2ac   : > { %3230 = vrsqrt.f32 %v2637_v39  ;;  %v2538_v4 = vadd.f32 %v2522_v13, %v2514_v21  ;;  %v2499_v38 = vrot.slane %v2483_v35, 1  ;;  %v2188_v2 = vpop.f32.mrb[18].mxu0  ;;  %v2611_v15 = vrot.slane %v4053_v50, %v3504_v33 }
 0x2ad   : > { %v4109_v34 = vadd.f32 %v2459_v10, %v2395_v40  ;;  %v2189_v3 = vadd.f32 %v2188_v2, %v4063_v56  ;;  %v2190_v41 = vpop.f32.mrb[19].mxu0  ;;  %v2615_v6 = vrot.slane %v4100_v26, %v3606_v54  ;;  %v2619_v45 = vrot.slane %v4100_v26, %v3504_v33 }
 0x2ae   : > { %v2630_v1 = vmul.f32 %v2599_v49, %v2538_v4  ;;  %v2515_v7 = vadd.f32 %v2499_v38, %v2483_v35  ;;  %v2523_v60 = vrot.slane %v2483_v35, 2  ;;  %v2191_v11 = vadd.f32 %v2190_v41, %v4063_v56 }
 0x2af   : > { %v2316_v30 = vmul.f32 %v2291_v0, %v2189_v3  ;;  %v2364_v42 = vmul.f32 %v2339_v52, %v2189_v3  ;;  %v2444_v17 = vmul.f32 %v2419_v53, %v2189_v3  ;;  %v2484_v18 = vmul.f32 %v2189_v3, %v2189_v3 }
 0x2b0   : > { %v2638_v48 = vmax.f32 %v2630_v1, 1e-12  ;;  %v2539_v19 = vadd.f32 %v2523_v60, %v2515_v7  ;;  %v2317_v49 = vmul.f32 %v2295_v36, %v2191_v11  ;;  %v2365_v20 = vmul.f32 %v2343_v28, %v2191_v11 }
 0x2b1   : > { %v2380_v0 = vrot.slane %v2364_v42, 1  ;;  %v2460_v58 = vrot.slane %v2444_v17, 2  ;;  %v2500_v37 = vrot.slane %v2484_v18, 1  ;;  %v2524_v51 = vrot.slane %v2484_v18, 2 }
 0x2b2   : > { %3232 = vrsqrt.f32 %v2638_v48  ;;  %v4232_v52 = vrot.slane %v4021_v22, %v3504_v33  ;;  %v2381_v12 = vrot.slane %v2365_v20, 1  ;;  %v4233_v59 = vrot.slane %v4013_v57, %v3553_v63  ;;  %v2259_v16 = vpop.f32.mrb[18].mxu1 }
 0x2b3   : > { %v2396_v36 = vadd.f32 %v2380_v0, %v2316_v30  ;;  %v2516_v5 = vadd.f32 %v2500_v37, %v2484_v18  ;;  %v2485_v31 = vmul.f32 %v2191_v11, %v2191_v11  ;;  %v2260_v28 = vadd.f32 %v2259_v16, %v4063_v56  ;;  %v2261_v39 = vpop.f32.mrb[19].mxu1 }
 0x2b4   : > { %v2631_v53 = vmul.f32 %v4232_v52, %v2539_v19  ;;  %v2445_v32 = vmul.f32 %v4233_v59, %v2191_v11  ;;  %v2397_v13 = vadd.f32 %v2381_v12, %v2317_v49  ;;  %v2262_v40 = vadd.f32 %v2261_v39, %v4063_v56 }
 0x2b5   : > { %v3229_v10 = vpop.eup %3228  ;;  %v4143_v22 = vadd.f32 %v2460_v58, %v2396_v36  ;;  %v2540_v4 = vadd.f32 %v2524_v51, %v2516_v5  ;;  %v2501_v38 = vrot.slane %v2485_v31, 1  ;;  %v2525_v2 = vrot.slane %v2485_v31, 2 }
 0x2b6   : > { %v2639_v21 = vmax.f32 %v2631_v53, 1e-12  ;;  %v2461_v35 = vrot.slane %v2445_v32, 2  ;;  %v3231_v57 = vpop.eup %3230  ;;  %v2652_v3 = vmul.f32 %v3229_v10, %v4090_v61  ;;  %v4234_v1 = vrot.slane %v4023_v23, %v3606_v54 }
 0x2b7   : > { %v2653_v60 = vmul.f32 %v3231_v57, %v4092_v9  ;;  %v4235_v56 = vrot.slane %v4053_v50, %v3606_v54  ;;  %v2517_v30 = vadd.f32 %v2501_v38, %v2485_v31  ;;  %v4236_v42 = vrot.slane %v4023_v23, %v3497_v29 }
 0x2b8   : > { %3234 = vrsqrt.f32 %v2639_v21  ;;  %v4146_v41 = vadd.f32 %v2461_v35, %v2397_v13  ;;  %v2318_v7 = vmul.f32 %v4234_v1, %v2260_v28  ;;  %v2664_v18 = vsub.f32 1.0, %v2652_v3 }
 0x2b9   : > { %v2632_v11 = vmul.f32 %v4235_v56, %v2540_v4  ;;  %v2366_v17 = vmul.f32 %v4236_v42, %v2260_v28  ;;  %v4237_v61 = vrot.slane %v4023_v23, %v3480_v25  ;;  %v2486_v19 = vmul.f32 %v2260_v28, %v2260_v28 }
 0x2ba   : > { %v4238_v49 = vrot.slane %v4023_v23, %v3504_v33  ;;  %v2665_v9 = vsub.f32 1.0, %v2653_v60  ;;  %v2541_v58 = vadd.f32 %v2525_v2, %v2517_v30  ;;  %v2713_v51 = vmul.f32 %v3966_v14, %v2664_v18 }
 0x2bb   : > { %v2446_v48 = vmul.f32 %v4237_v61, %v2260_v28  ;;  %v2640_v0 = vmax.f32 %v2632_v11, 1e-12  ;;  %v2382_v37 = vrot.slane %v2366_v17, 1  ;;  %v2502_v53 = vrot.slane %v2486_v19, 1 }
 0x2bc   : > { %v2319_v20 = vmul.f32 %v4238_v49, %v2262_v40  ;;  %v2526_v29 = vrot.slane %v2486_v19, 2  ;;  %v2714_v12 = vmul.f32 %v3969_v43, %v2665_v9  ;;  %v2633_v25 = vmul.f32 %v2611_v15, %v2541_v58  ;;  %v3233_v32 = vpop.eup %3232 }
 0x2bd   : > { %v2462_v52 = vrot.slane %v2446_v48, 2  ;;  %3236 = vrsqrt.f32 %v2640_v0  ;;  %v2398_v59 = vadd.f32 %v2382_v37, %v2318_v7  ;;  %v2518_v16 = vadd.f32 %v2502_v53, %v2486_v19 }
 0x2be   : > { %v4239_v36 = vrot.slane %v4023_v23, %v3550_v62  ;;  %v4240_v14 = vrot.slane %v4023_v23, %v3553_v63  ;;  %v2487_v28 = vmul.f32 %v2262_v40, %v2262_v40  ;;  %v2654_v39 = vmul.f32 %v3233_v32, %v4105_v27 }
 0x2bf   : > { %v2641_v43 = vmax.f32 %v2633_v25, 1e-12  ;;  %v2478_v21 = vadd.f32 %v2462_v52, %v2398_v59  ;;  %v2721_v13 = vsel %vm731_vm4, %v2713_v51, 0.0  ;;  %v2542_v50 = vadd.f32 %v2526_v29, %v2518_v16 }
 0x2c0   : > { %v2367_v5 = vmul.f32 %v4239_v36, %v2262_v40  ;;  %v2447_v31 = vmul.f32 %v4240_v14, %v2262_v40  ;;  %v2503_v10 = vrot.slane %v2487_v28, 1  ;;  %v2666_v4 = vsub.f32 1.0, %v2654_v39 }
 0x2c1   : > { %3238 = vrsqrt.f32 %v2641_v43  ;;  %v2527_v38 = vrot.slane %v2487_v28, 2  ;;  %v2722_v62 = vsel %vm731_vm4, %v2714_v12, 0.0  ;;  %v2634_v63 = vmul.f32 %v2615_v6, %v2542_v50 }
 0x2c2   : > { %v2383_v15 = vrot.slane %v2367_v5, 1  ;;  %v2463_v35 = vrot.slane %v2447_v31, 2  ;;  %v3235_v2 = vpop.eup %3234  ;;  %v2519_v27 = vadd.f32 %v2503_v10, %v2487_v28  ;;  %v2723_v40 = vadd.f32 %v2722_v62, %v2721_v13 }
 0x2c3   : > { %v2655_v57 = vmul.f32 %v3235_v2, %v4109_v34  ;;  %v2715_v3 = vmul.f32 %v3972_v44, %v2666_v4  ;;  %v2642_v1 = vmax.f32 %v2634_v63, 1e-12 }
 0x2c4   : > { %v2399_v23 = vadd.f32 %v2383_v15, %v2319_v20  ;;  %v2543_v7 = vadd.f32 %v2527_v38, %v2519_v27 }
 0x2c5   : > { %v2667_v56 = vsub.f32 1.0, %v2655_v57  ;;  %v2724_v11 = vsel %vm731_vm4, %v2715_v3, 0.0  ;;  %3240 = vrsqrt.f32 %v2642_v1 }
 0x2c6   : > { %v2479_v60 = vadd.f32 %v2463_v35, %v2399_v23  ;;  %v2635_v30 = vmul.f32 %v2619_v45, %v2543_v7  ;;  %v2725_v54 = vadd.f32 %v2724_v11, %v2723_v40 }
 0x2c7   : > { %v3237_v6 = vpop.eup %3236  ;;  %v2716_v42 = vmul.f32 %v3975_v46, %v2667_v56 }
 0x2c8   : > { %v2643_v17 = vmax.f32 %v2635_v30, 1e-12  ;;  %v2656_v34 = vmul.f32 %v3237_v6, %v4143_v22 }
 0x2c9   : > { %v2726_v44 = vsel %vm731_vm4, %v2716_v42, 0.0 }
 0x2ca   : > { %3242 = vrsqrt.f32 %v2643_v17  ;;  %v2668_v18 = vsub.f32 1.0, %v2656_v34  ;;  %v2727_v61 = vadd.f32 %v2726_v44, %v2725_v54 }
 0x2cb   : > { %v3239_v48 = vpop.eup %3238 }
 0x2cc   : > { %v2657_v19 = vmul.f32 %v3239_v48, %v4146_v41  ;;  %v2717_v49 = vmul.f32 %v3978_v47, %v2668_v18 }
 0x2ce   : > { %v2669_v20 = vsub.f32 1.0, %v2657_v19  ;;  %v2728_v33 = vsel %vm731_vm4, %v2717_v49, 0.0 }
 0x2cf   : > { %v2729_v26 = vadd.f32 %v2728_v33, %v2727_v61  ;;  %v3241_v45 = vpop.eup %3240 }
 0x2d0   : > { %v2718_v46 = vmul.f32 %v3987_v55, %v2669_v20  ;;  %v2658_v9 = vmul.f32 %v3241_v45, %v2478_v21  ;;  %v2762_v55 = vpop.xlane.xlu1 %2761 }
 0x2d1   : > { %v2763_v59 = vrot.slane %v2762_v55, 4 }
 0x2d2   : > { %v2730_v22 = vsel %vm731_vm4, %v2718_v46, 0.0  ;;  %v2670_v0 = vsub.f32 1.0, %v2658_v9 }
 0x2d3   : > { %v2731_v58 = vadd.f32 %v2730_v22, %v2729_v26  ;;  %v2764_v32 = vadd.f32 %v2763_v59, %v2762_v55 }
 0x2d4   : > { %v3243_v37 = vpop.eup %3242  ;;  %v2719_v52 = vmul.f32 %v3992_v24, %v2670_v0 }
 0x2d5   : > { %v2659_v51 = vmul.f32 %v3243_v37, %v2479_v60  ;;  %v2765_v16 = vrot.slane %v2764_v32, 2 }
 0x2d6   : > { %v2732_v41 = vsel %vm731_vm4, %v2719_v52, 0.0 }
 0x2d7   : > { %v2671_v53 = vsub.f32 1.0, %v2659_v51  ;;  %v2733_v47 = vadd.f32 %v2732_v41, %v2731_v58  ;;  %v2766_v14 = vadd.f32 %v2765_v16, %v2764_v32 }
 0x2d9   : > { %v2720_v29 = vmul.f32 %v3997_v8, %v2671_v53  ;;  %v2767_v39 = vrot.slane %v2766_v14, 1 }
 0x2db   : > { %v2734_v12 = vsel %vm731_vm4, %v2720_v29, 0.0  ;;  %v2768_v21 = vadd.f32 %v2767_v39, %v2766_v14 }
 0x2dc   : > { %v2735_v25 = vadd.f32 %v2734_v12, %v2733_v47 }
 0x2de   : > { %2736 = vadd.xlane.f32.xlu0 %v2735_v25 }
 0x36b   : > { %v2737_v36 = vpop.xlane.xlu0 %2736 }
 0x36c   : > { %v2738_v5 = vrot.slane %v2737_v36, 4 }
 0x36e   : > { %v2739_v24 = vadd.f32 %v2738_v5, %v2737_v36 }
 0x370   : > { %v2740_v31 = vrot.slane %v2739_v24, 2 }
 0x372   : > { %v2741_v28 = vadd.f32 %v2740_v31, %v2739_v24 }
 0x374   : > { %v2742_v43 = vrot.slane %v2741_v28, 1 }
 0x376   : > { %v2743_v8 = vadd.f32 %v2742_v43, %v2741_v28 }
 0x378   : > { %3173 = vpush %v2743_v8 }
 0x379   : > { %3175 = vpush %v2768_v21 }
 0x3a9   : > { %s3174_s15 = spop %3173 }
 0x3aa   : > { %v2745_v13 = vstv %s3174_s15  ;;  %s3176_s16 = spop %3175 }
 0x3ab   : > { %v2770_v50 = vstv %s3176_s16 }
 0x3ac   : > { %v2772_v15 = vsel %vm2771_vm10, %v2745_v13, %v2770_v50 }
 0x3ad   : > { %2774 = vst.msk [vmem:[%s392_s22] sm:$0x1] %vm2773_vm11, %v2772_v15 }
 0x3ae PF: > { %s18_s9 = sadd.s32 1, %s3282_s9   ;;  %s4241_s27 = smov %s3274_s29 }
 0x3af   : > { %p15_p11 = scmp.ge.s32.totalorder %s18_s9, 6   ;;  %s4242_s28 = smov %s3278_s30 }
 0x3b0   : > { %s4243_s29 = smov %s4246_s10  ;;  %s4244_s30 = smov %s4250_s11 }
 0x3b1   :  { %17 = sbr.rel (!%p15_p11) target bundleno = 3 (0x3), region = 96 }

</bundles_post_ra>
